<compile_context>
chip_gen: v7x
topology: tpu7x:2x2x1
jax: 0.10.0
libtpu: 0.0.40
codegen_flags: <defaults>
</compile_context>

<pallas_src>
import functools
import math

import jax
import jax.numpy as jnp
from jax.experimental import pallas as pl
from jax.experimental.pallas import tpu as pltpu


def _round_up(x: int, m: int) -> int:
    return (x + m - 1) // m * m


def _pool_params(in_dim: int, scale: int):
    """Replicates the (Python-2 style) arithmetic of the PyTorch module."""
    wid = int(math.ceil(in_dim / scale))
    pad = (wid * scale - in_dim + 1) // 2          # original code used integer '/'
    out = (in_dim + 2 * pad - wid) // wid + 1      # MaxPool3d, ceil_mode=False
    return wid, pad, out


def _window_spans(in_dim: int, wid: int, pad: int, out: int):
    """Static, clipped [start, stop) input ranges of every pooling window.

    Clipping a window to the valid input range is exactly equivalent to padding
    with the max-identity, so no padding values are ever materialized.
    """
    spans = []
    for i in range(out):
        lo = i * wid - pad
        hi = min(lo + wid, in_dim)
        lo = max(lo, 0)
        if hi <= lo:
            raise ValueError(
                "Empty pooling window (pad > kernel//2); PyTorch's MaxPool3d "
                "rejects this configuration too.")
        spans.append((lo, hi))
    return tuple(spans)


def _max_identity(dtype):
    dtype = jnp.dtype(dtype)
    if jnp.issubdtype(dtype, jnp.floating):
        return jnp.array(-jnp.inf, dtype)
    return jnp.array(jnp.iinfo(dtype).min, dtype)


def _pick_bc_tile(bc_rows: int, row_bytes: int, budget_bytes: int = 2 << 20) -> int:
    """Rows of x (one row = one (b, c) volume) processed per grid step.

    Largest divisor of bc_rows whose block stays under the byte budget, but
    keep >= 2 grid steps when possible so the "parallel" axis pipelines and can
    shard across v7x's two TensorCores.
    """
    max_rows = max(1, budget_bytes // max(row_bytes, 1))
    fits = [t for t in range(1, bc_rows + 1) if bc_rows % t == 0 and t <= max_rows]
    best = max(fits)
    if best == bc_rows and bc_rows % 2 == 0 and bc_rows // 2 <= max_rows:
        best = bc_rows // 2        # guarantee 2 parallel steps (v7x: both cores)
    return best


def _make_spp_kernel(scale_specs):
    """scale_specs: tuple of (h_spans, w_spans, t_spans) per pyramid scale."""

    def _pool_h(a, spans):
        # Leading-dim pooling via static unit slices + elementwise max only
        # (cheapest path: just elementwise max across vreg planes).
        pieces = []
        for lo, hi in spans:
            acc = a[:, lo:lo + 1, :, :]
            for p in range(lo + 1, hi):
                acc = jnp.maximum(acc, a[:, p:p + 1, :, :])
            pieces.append(acc)
        return pieces[0] if len(pieces) == 1 else jnp.concatenate(pieces, axis=1)

    def kernel(x_ref, *o_refs):
        xb = x_ref[...]                                  # (bc, H, W, T), input dtype
        for (h_spans, w_spans, t_spans), o_ref in zip(scale_specs, o_refs):
            # Stage 1: H windows (leading dim) — shrinks the block first.
            xh = _pool_h(xb, h_spans)                    # (bc, oh, W, T)
            # Stage 2: W windows (sublane reduce) on the already-reduced array.
            wp = [jnp.max(xh[:, :, w0:w1, :], axis=2, keepdims=True)
                  for w0, w1 in w_spans]
            xw = wp[0] if len(wp) == 1 else jnp.concatenate(wp, axis=2)
            # Stage 3: T windows (lane reduce), done last on the smallest array.
            # TODO(synk): when T << 128, fold W*T onto the lane axis and reduce
            # the T windows with pltpu.roll + max to cut lane-padding waste.
            tp = [jnp.max(xw[:, :, :, t0:t1], axis=3, keepdims=True)
                  for t0, t1 in t_spans]
            xt = tp[0] if len(tp) == 1 else jnp.concatenate(tp, axis=3)
            o_ref[...] = xt                              # (bc, oh, ow, ot)

    return kernel


def spp3d_pallas(x: jax.Array, scale_list) -> jax.Array:
    """x: [B, C, H, W, T] -> [B, sum_s C*oh_s*ow_s*ot_s]  (SPP3DLayer.forward)."""
    B, C, H, W, T = x.shape
    BC = B * C
    scales = [int(s) for s in scale_list]

    scale_specs, out_dims = [], []
    for s in scales:
        h_wid, h_pad, oh = _pool_params(H, s)
        w_wid, w_pad, ow = _pool_params(W, s)
        t_wid, t_pad, ot = _pool_params(T, s)
        scale_specs.append((_window_spans(H, h_wid, h_pad, oh),
                            _window_spans(W, w_wid, w_pad, ow),
                            _window_spans(T, t_wid, t_pad, ot)))
        out_dims.append((oh, ow, ot))

    xr = x.reshape(BC, H, W, T)      # free: collapses contiguous leading dims

    # VMEM footprint of one (b, c) row of the input block, including the
    # (sublane, lane) tile padding of the trailing (W, T) dims.
    itemsize = jnp.dtype(x.dtype).itemsize
    sub_pack = 8 * max(1, 4 // itemsize)     # sub-32-bit dtypes pack along sublanes
    row_bytes = H * _round_up(W, sub_pack) * _round_up(T, 128) * itemsize
    bc_tile = _pick_bc_tile(BC, row_bytes)

    kernel = _make_spp_kernel(tuple(scale_specs))
    out_shape = tuple(jax.ShapeDtypeStruct((BC,) + d, x.dtype) for d in out_dims)
    out_specs = tuple(
        pl.BlockSpec((bc_tile,) + d, lambda i: (i, 0, 0, 0)) for d in out_dims)

    outs = pl.pallas_call(
        kernel,
        out_shape=out_shape,
        grid=(BC // bc_tile,),
        in_specs=[pl.BlockSpec((bc_tile, H, W, T), lambda i: (i, 0, 0, 0))],
        out_specs=out_specs,
        compiler_params=pltpu.CompilerParams(dimension_semantics=("parallel",)),
    )(xr)
    if not isinstance(outs, (tuple, list)):
        outs = (outs,)

    # Final (tiny) reorder to PyTorch's layout: per scale (B*C, oh, ow, ot)
    # -> (B, C*oh*ow*ot), then concat over scales.  This touches only the
    # pooled feature vector (a few hundred elements), never x.
    # TODO(synk): fold this into the kernel by gridding over B with all C
    # channels per block and writing one scale-major (B, sum_s C*R_s) output.
    cols = [o.reshape(B, -1) for o in outs]
    return cols[0] if len(cols) == 1 else jnp.concatenate(cols, axis=1)


def spp3d_reference(x: jax.Array, scale_list) -> jax.Array:
    """Independent pure-JAX reference matching nn.MaxPool3d semantics."""
    B, C, H, W, T = x.shape
    init = _max_identity(x.dtype)        # valid for float AND integer dtypes
    outs = []
    for s in scale_list:
        h_wid, h_pad, _ = _pool_params(H, int(s))
        w_wid, w_pad, _ = _pool_params(W, int(s))
        t_wid, t_pad, _ = _pool_params(T, int(s))
        r = jax.lax.reduce_window(
            x, init, jax.lax.max,
            window_dimensions=(1, 1, h_wid, w_wid, t_wid),
            window_strides=(1, 1, h_wid, w_wid, t_wid),
            padding=((0, 0), (0, 0), (h_pad, h_pad), (w_pad, w_pad), (t_pad, t_pad)),
        )
        outs.append(r.reshape(B, -1))
    return jnp.concatenate(outs, axis=1)


if __name__ == "__main__":
    key = jax.random.PRNGKey(0)
    # Small shapes consistent with the module: batch=2, channels=4, H=W=T=8.
    x = jax.random.normal(key, (2, 4, 8, 8, 8), dtype=jnp.float32)
    scale_list = (1, 2, 4)

    spp_fn = jax.jit(functools.partial(spp3d_pallas, scale_list=scale_list))
    spp = jax.block_until_ready(spp_fn(x))

    ref = spp3d_reference(x, scale_list)
    assert spp.shape == (2, 4 * (1 + 8 + 64)), spp.shape
    assert jnp.allclose(spp, ref), "Pallas SPP3D mismatch vs reference"

    print("KERNEL_OK")
</pallas_src>

<mosaic_0001>
module attributes {stable_mosaic.version = 11 : i64} {
  func.func @kernel(%arg0: i32, %arg1: memref<4x8x8x8xf32, #tpu.memory_space<vmem>>, %arg2: memref<4x1x1x1xf32, #tpu.memory_space<vmem>>, %arg3: memref<4x2x2x2xf32, #tpu.memory_space<vmem>>, %arg4: memref<4x4x4x4xf32, #tpu.memory_space<vmem>>) attributes {dimension_semantics = [#tpu.dimension_semantics<parallel>], iteration_bounds = array<i64: 2>, scalar_prefetch = 0 : i64, scratch_operands = 0 : i64, tpu.core_type = #tpu.core_type<tc>, window_params = [{transform_indices = @transform_0, window_bounds = array<i64: 4, 8, 8, 8>}, {transform_indices = @transform_1, window_bounds = array<i64: 4, 1, 1, 1>}, {transform_indices = @transform_2, window_bounds = array<i64: 4, 2, 2, 2>}, {transform_indices = @transform_3, window_bounds = array<i64: 4, 4, 4, 4>}]} {
    %c0 = arith.constant 0 : index
    %c0_0 = arith.constant 0 : index
    %c0_1 = arith.constant 0 : index
    %c0_2 = arith.constant 0 : index
    %0 = vector.load %arg1[%c0, %c0_0, %c0_1, %c0_2] : memref<4x8x8x8xf32, #tpu.memory_space<vmem>>, vector<4x8x8x8xf32>
    %1 = vector.extract_strided_slice %0 {offsets = [0, 0, 0, 0], sizes = [4, 1, 8, 8], strides = [1, 1, 1, 1]} : vector<4x8x8x8xf32> to vector<4x1x8x8xf32>
    %2 = vector.extract_strided_slice %0 {offsets = [0, 1, 0, 0], sizes = [4, 1, 8, 8], strides = [1, 1, 1, 1]} : vector<4x8x8x8xf32> to vector<4x1x8x8xf32>
    %3 = arith.maximumf %1, %2 : vector<4x1x8x8xf32>
    %4 = vector.extract_strided_slice %0 {offsets = [0, 2, 0, 0], sizes = [4, 1, 8, 8], strides = [1, 1, 1, 1]} : vector<4x8x8x8xf32> to vector<4x1x8x8xf32>
    %5 = arith.maximumf %3, %4 : vector<4x1x8x8xf32>
    %6 = vector.extract_strided_slice %0 {offsets = [0, 3, 0, 0], sizes = [4, 1, 8, 8], strides = [1, 1, 1, 1]} : vector<4x8x8x8xf32> to vector<4x1x8x8xf32>
    %7 = arith.maximumf %5, %6 : vector<4x1x8x8xf32>
    %8 = vector.extract_strided_slice %0 {offsets = [0, 4, 0, 0], sizes = [4, 1, 8, 8], strides = [1, 1, 1, 1]} : vector<4x8x8x8xf32> to vector<4x1x8x8xf32>
    %9 = arith.maximumf %7, %8 : vector<4x1x8x8xf32>
    %10 = vector.extract_strided_slice %0 {offsets = [0, 5, 0, 0], sizes = [4, 1, 8, 8], strides = [1, 1, 1, 1]} : vector<4x8x8x8xf32> to vector<4x1x8x8xf32>
    %11 = arith.maximumf %9, %10 : vector<4x1x8x8xf32>
    %12 = vector.extract_strided_slice %0 {offsets = [0, 6, 0, 0], sizes = [4, 1, 8, 8], strides = [1, 1, 1, 1]} : vector<4x8x8x8xf32> to vector<4x1x8x8xf32>
    %13 = arith.maximumf %11, %12 : vector<4x1x8x8xf32>
    %14 = vector.extract_strided_slice %0 {offsets = [0, 7, 0, 0], sizes = [4, 1, 8, 8], strides = [1, 1, 1, 1]} : vector<4x8x8x8xf32> to vector<4x1x8x8xf32>
    %15 = arith.maximumf %13, %14 : vector<4x1x8x8xf32>
    %cst = arith.constant dense<0xFF800000> : vector<4x1x8xf32>
    %16 = vector.multi_reduction <maximumf>, %15, %cst [2] : vector<4x1x8x8xf32> to vector<4x1x8xf32>
    %17 = vector.shape_cast %16 : vector<4x1x8xf32> to vector<4x1x1x8xf32>
    %cst_3 = arith.constant dense<0xFF800000> : vector<4x1x1xf32>
    %18 = vector.multi_reduction <maximumf>, %17, %cst_3 [3] : vector<4x1x1x8xf32> to vector<4x1x1xf32>
    %19 = vector.shape_cast %18 : vector<4x1x1xf32> to vector<4x1x1x1xf32>
    %c0_4 = arith.constant 0 : index
    %c0_5 = arith.constant 0 : index
    %c0_6 = arith.constant 0 : index
    %c0_7 = arith.constant 0 : index
    %20 = vector.load %arg2[%c0_4, %c0_5, %c0_6, %c0_7] : memref<4x1x1x1xf32, #tpu.memory_space<vmem>>, vector<4x1x1x1xf32>
    tpu.vector_store %arg2[%c0_4, %c0_5, %c0_6, %c0_7], %19 {strides = array<i32>} : memref<4x1x1x1xf32, #tpu.memory_space<vmem>>, vector<4x1x1x1xf32>,
    %21 = vector.extract_strided_slice %0 {offsets = [0, 0, 0, 0], sizes = [4, 1, 8, 8], strides = [1, 1, 1, 1]} : vector<4x8x8x8xf32> to vector<4x1x8x8xf32>
    %22 = vector.extract_strided_slice %0 {offsets = [0, 1, 0, 0], sizes = [4, 1, 8, 8], strides = [1, 1, 1, 1]} : vector<4x8x8x8xf32> to vector<4x1x8x8xf32>
    %23 = arith.maximumf %21, %22 : vector<4x1x8x8xf32>
    %24 = vector.extract_strided_slice %0 {offsets = [0, 2, 0, 0], sizes = [4, 1, 8, 8], strides = [1, 1, 1, 1]} : vector<4x8x8x8xf32> to vector<4x1x8x8xf32>
    %25 = arith.maximumf %23, %24 : vector<4x1x8x8xf32>
    %26 = vector.extract_strided_slice %0 {offsets = [0, 3, 0, 0], sizes = [4, 1, 8, 8], strides = [1, 1, 1, 1]} : vector<4x8x8x8xf32> to vector<4x1x8x8xf32>
    %27 = arith.maximumf %25, %26 : vector<4x1x8x8xf32>
    %28 = vector.extract_strided_slice %0 {offsets = [0, 4, 0, 0], sizes = [4, 1, 8, 8], strides = [1, 1, 1, 1]} : vector<4x8x8x8xf32> to vector<4x1x8x8xf32>
    %29 = vector.extract_strided_slice %0 {offsets = [0, 5, 0, 0], sizes = [4, 1, 8, 8], strides = [1, 1, 1, 1]} : vector<4x8x8x8xf32> to vector<4x1x8x8xf32>
    %30 = arith.maximumf %28, %29 : vector<4x1x8x8xf32>
    %31 = vector.extract_strided_slice %0 {offsets = [0, 6, 0, 0], sizes = [4, 1, 8, 8], strides = [1, 1, 1, 1]} : vector<4x8x8x8xf32> to vector<4x1x8x8xf32>
    %32 = arith.maximumf %30, %31 : vector<4x1x8x8xf32>
    %33 = vector.extract_strided_slice %0 {offsets = [0, 7, 0, 0], sizes = [4, 1, 8, 8], strides = [1, 1, 1, 1]} : vector<4x8x8x8xf32> to vector<4x1x8x8xf32>
    %34 = arith.maximumf %32, %33 : vector<4x1x8x8xf32>
    %35 = tpu.concatenate %27, %34 in 1 : vector<4x1x8x8xf32>, vector<4x1x8x8xf32> -> vector<4x2x8x8xf32>
    %36 = vector.extract_strided_slice %35 {offsets = [0, 0, 0, 0], sizes = [4, 2, 4, 8], strides = [1, 1, 1, 1]} : vector<4x2x8x8xf32> to vector<4x2x4x8xf32>
    %cst_8 = arith.constant dense<0xFF800000> : vector<4x2x8xf32>
    %37 = vector.multi_reduction <maximumf>, %36, %cst_8 [2] : vector<4x2x4x8xf32> to vector<4x2x8xf32>
    %38 = vector.shape_cast %37 : vector<4x2x8xf32> to vector<4x2x1x8xf32>
    %39 = vector.extract_strided_slice %35 {offsets = [0, 0, 4, 0], sizes = [4, 2, 4, 8], strides = [1, 1, 1, 1]} : vector<4x2x8x8xf32> to vector<4x2x4x8xf32>
    %cst_9 = arith.constant dense<0xFF800000> : vector<4x2x8xf32>
    %40 = vector.multi_reduction <maximumf>, %39, %cst_9 [2] : vector<4x2x4x8xf32> to vector<4x2x8xf32>
    %41 = vector.shape_cast %40 : vector<4x2x8xf32> to vector<4x2x1x8xf32>
    %42 = tpu.concatenate %38, %41 in 2 : vector<4x2x1x8xf32>, vector<4x2x1x8xf32> -> vector<4x2x2x8xf32>
    %43 = vector.extract_strided_slice %42 {offsets = [0, 0, 0, 0], sizes = [4, 2, 2, 4], strides = [1, 1, 1, 1]} : vector<4x2x2x8xf32> to vector<4x2x2x4xf32>
    %cst_10 = arith.constant dense<0xFF800000> : vector<4x2x2xf32>
    %44 = vector.multi_reduction <maximumf>, %43, %cst_10 [3] : vector<4x2x2x4xf32> to vector<4x2x2xf32>
    %45 = vector.shape_cast %44 : vector<4x2x2xf32> to vector<4x2x2x1xf32>
    %46 = vector.extract_strided_slice %42 {offsets = [0, 0, 0, 4], sizes = [4, 2, 2, 4], strides = [1, 1, 1, 1]} : vector<4x2x2x8xf32> to vector<4x2x2x4xf32>
    %cst_11 = arith.constant dense<0xFF800000> : vector<4x2x2xf32>
    %47 = vector.multi_reduction <maximumf>, %46, %cst_11 [3] : vector<4x2x2x4xf32> to vector<4x2x2xf32>
    %48 = vector.shape_cast %47 : vector<4x2x2xf32> to vector<4x2x2x1xf32>
    %49 = tpu.concatenate %45, %48 in 3 : vector<4x2x2x1xf32>, vector<4x2x2x1xf32> -> vector<4x2x2x2xf32>
    %c0_12 = arith.constant 0 : index
    %c0_13 = arith.constant 0 : index
    %c0_14 = arith.constant 0 : index
    %c0_15 = arith.constant 0 : index
    %50 = vector.load %arg3[%c0_12, %c0_13, %c0_14, %c0_15] : memref<4x2x2x2xf32, #tpu.memory_space<vmem>>, vector<4x2x2x2xf32>
    tpu.vector_store %arg3[%c0_12, %c0_13, %c0_14, %c0_15], %49 {strides = array<i32>} : memref<4x2x2x2xf32, #tpu.memory_space<vmem>>, vector<4x2x2x2xf32>,
    %51 = vector.extract_strided_slice %0 {offsets = [0, 0, 0, 0], sizes = [4, 1, 8, 8], strides = [1, 1, 1, 1]} : vector<4x8x8x8xf32> to vector<4x1x8x8xf32>
    %52 = vector.extract_strided_slice %0 {offsets = [0, 1, 0, 0], sizes = [4, 1, 8, 8], strides = [1, 1, 1, 1]} : vector<4x8x8x8xf32> to vector<4x1x8x8xf32>
    %53 = arith.maximumf %51, %52 : vector<4x1x8x8xf32>
    %54 = vector.extract_strided_slice %0 {offsets = [0, 2, 0, 0], sizes = [4, 1, 8, 8], strides = [1, 1, 1, 1]} : vector<4x8x8x8xf32> to vector<4x1x8x8xf32>
    %55 = vector.extract_strided_slice %0 {offsets = [0, 3, 0, 0], sizes = [4, 1, 8, 8], strides = [1, 1, 1, 1]} : vector<4x8x8x8xf32> to vector<4x1x8x8xf32>
    %56 = arith.maximumf %54, %55 : vector<4x1x8x8xf32>
    %57 = vector.extract_strided_slice %0 {offsets = [0, 4, 0, 0], sizes = [4, 1, 8, 8], strides = [1, 1, 1, 1]} : vector<4x8x8x8xf32> to vector<4x1x8x8xf32>
    %58 = vector.extract_strided_slice %0 {offsets = [0, 5, 0, 0], sizes = [4, 1, 8, 8], strides = [1, 1, 1, 1]} : vector<4x8x8x8xf32> to vector<4x1x8x8xf32>
    %59 = arith.maximumf %57, %58 : vector<4x1x8x8xf32>
    %60 = vector.extract_strided_slice %0 {offsets = [0, 6, 0, 0], sizes = [4, 1, 8, 8], strides = [1, 1, 1, 1]} : vector<4x8x8x8xf32> to vector<4x1x8x8xf32>
    %61 = vector.extract_strided_slice %0 {offsets = [0, 7, 0, 0], sizes = [4, 1, 8, 8], strides = [1, 1, 1, 1]} : vector<4x8x8x8xf32> to vector<4x1x8x8xf32>
    %62 = arith.maximumf %60, %61 : vector<4x1x8x8xf32>
    %63 = tpu.concatenate %53, %56, %59, %62 in 1 : vector<4x1x8x8xf32>, vector<4x1x8x8xf32>, vector<4x1x8x8xf32>, vector<4x1x8x8xf32> -> vector<4x4x8x8xf32>
    %64 = vector.extract_strided_slice %63 {offsets = [0, 0, 0, 0], sizes = [4, 4, 2, 8], strides = [1, 1, 1, 1]} : vector<4x4x8x8xf32> to vector<4x4x2x8xf32>
    %cst_16 = arith.constant dense<0xFF800000> : vector<4x4x8xf32>
    %65 = vector.multi_reduction <maximumf>, %64, %cst_16 [2] : vector<4x4x2x8xf32> to vector<4x4x8xf32>
    %66 = vector.shape_cast %65 : vector<4x4x8xf32> to vector<4x4x1x8xf32>
    %67 = vector.extract_strided_slice %63 {offsets = [0, 0, 2, 0], sizes = [4, 4, 2, 8], strides = [1, 1, 1, 1]} : vector<4x4x8x8xf32> to vector<4x4x2x8xf32>
    %cst_17 = arith.constant dense<0xFF800000> : vector<4x4x8xf32>
    %68 = vector.multi_reduction <maximumf>, %67, %cst_17 [2] : vector<4x4x2x8xf32> to vector<4x4x8xf32>
    %69 = vector.shape_cast %68 : vector<4x4x8xf32> to vector<4x4x1x8xf32>
    %70 = vector.extract_strided_slice %63 {offsets = [0, 0, 4, 0], sizes = [4, 4, 2, 8], strides = [1, 1, 1, 1]} : vector<4x4x8x8xf32> to vector<4x4x2x8xf32>
    %cst_18 = arith.constant dense<0xFF800000> : vector<4x4x8xf32>
    %71 = vector.multi_reduction <maximumf>, %70, %cst_18 [2] : vector<4x4x2x8xf32> to vector<4x4x8xf32>
    %72 = vector.shape_cast %71 : vector<4x4x8xf32> to vector<4x4x1x8xf32>
    %73 = vector.extract_strided_slice %63 {offsets = [0, 0, 6, 0], sizes = [4, 4, 2, 8], strides = [1, 1, 1, 1]} : vector<4x4x8x8xf32> to vector<4x4x2x8xf32>
    %cst_19 = arith.constant dense<0xFF800000> : vector<4x4x8xf32>
    %74 = vector.multi_reduction <maximumf>, %73, %cst_19 [2] : vector<4x4x2x8xf32> to vector<4x4x8xf32>
    %75 = vector.shape_cast %74 : vector<4x4x8xf32> to vector<4x4x1x8xf32>
    %76 = tpu.concatenate %66, %69, %72, %75 in 2 : vector<4x4x1x8xf32>, vector<4x4x1x8xf32>, vector<4x4x1x8xf32>, vector<4x4x1x8xf32> -> vector<4x4x4x8xf32>
    %77 = vector.extract_strided_slice %76 {offsets = [0, 0, 0, 0], sizes = [4, 4, 4, 2], strides = [1, 1, 1, 1]} : vector<4x4x4x8xf32> to vector<4x4x4x2xf32>
    %cst_20 = arith.constant dense<0xFF800000> : vector<4x4x4xf32>
    %78 = vector.multi_reduction <maximumf>, %77, %cst_20 [3] : vector<4x4x4x2xf32> to vector<4x4x4xf32>
    %79 = vector.shape_cast %78 : vector<4x4x4xf32> to vector<4x4x4x1xf32>
    %80 = vector.extract_strided_slice %76 {offsets = [0, 0, 0, 2], sizes = [4, 4, 4, 2], strides = [1, 1, 1, 1]} : vector<4x4x4x8xf32> to vector<4x4x4x2xf32>
    %cst_21 = arith.constant dense<0xFF800000> : vector<4x4x4xf32>
    %81 = vector.multi_reduction <maximumf>, %80, %cst_21 [3] : vector<4x4x4x2xf32> to vector<4x4x4xf32>
    %82 = vector.shape_cast %81 : vector<4x4x4xf32> to vector<4x4x4x1xf32>
    %83 = vector.extract_strided_slice %76 {offsets = [0, 0, 0, 4], sizes = [4, 4, 4, 2], strides = [1, 1, 1, 1]} : vector<4x4x4x8xf32> to vector<4x4x4x2xf32>
    %cst_22 = arith.constant dense<0xFF800000> : vector<4x4x4xf32>
    %84 = vector.multi_reduction <maximumf>, %83, %cst_22 [3] : vector<4x4x4x2xf32> to vector<4x4x4xf32>
    %85 = vector.shape_cast %84 : vector<4x4x4xf32> to vector<4x4x4x1xf32>
    %86 = vector.extract_strided_slice %76 {offsets = [0, 0, 0, 6], sizes = [4, 4, 4, 2], strides = [1, 1, 1, 1]} : vector<4x4x4x8xf32> to vector<4x4x4x2xf32>
    %cst_23 = arith.constant dense<0xFF800000> : vector<4x4x4xf32>
    %87 = vector.multi_reduction <maximumf>, %86, %cst_23 [3] : vector<4x4x4x2xf32> to vector<4x4x4xf32>
    %88 = vector.shape_cast %87 : vector<4x4x4xf32> to vector<4x4x4x1xf32>
    %89 = tpu.concatenate %79, %82, %85, %88 in 3 : vector<4x4x4x1xf32>, vector<4x4x4x1xf32>, vector<4x4x4x1xf32>, vector<4x4x4x1xf32> -> vector<4x4x4x4xf32>
    %c0_24 = arith.constant 0 : index
    %c0_25 = arith.constant 0 : index
    %c0_26 = arith.constant 0 : index
    %c0_27 = arith.constant 0 : index
    %90 = vector.load %arg4[%c0_24, %c0_25, %c0_26, %c0_27] : memref<4x4x4x4xf32, #tpu.memory_space<vmem>>, vector<4x4x4x4xf32>
    tpu.vector_store %arg4[%c0_24, %c0_25, %c0_26, %c0_27], %89 {strides = array<i32>} : memref<4x4x4x4xf32, #tpu.memory_space<vmem>>, vector<4x4x4x4xf32>,
    return
  }
  func.func @transform_0(%arg0: i32) -> (i32, i32, i32, i32) {
    %c0_i32 = arith.constant 0 : i32
    %c0_i32_0 = arith.constant 0 : i32
    %c0_i32_1 = arith.constant 0 : i32
    %c0_i32_2 = arith.constant 0 : i32
    return %arg0, %c0_i32, %c0_i32_0, %c0_i32_1 : i32, i32, i32, i32
  }
  func.func @transform_1(%arg0: i32) -> (i32, i32, i32, i32) {
    %c0_i32 = arith.constant 0 : i32
    %c0_i32_0 = arith.constant 0 : i32
    %c0_i32_1 = arith.constant 0 : i32
    %c0_i32_2 = arith.constant 0 : i32
    return %arg0, %c0_i32, %c0_i32_0, %c0_i32_1 : i32, i32, i32, i32
  }
  func.func @transform_2(%arg0: i32) -> (i32, i32, i32, i32) {
    %c0_i32 = arith.constant 0 : i32
    %c0_i32_0 = arith.constant 0 : i32
    %c0_i32_1 = arith.constant 0 : i32
    %c0_i32_2 = arith.constant 0 : i32
    return %arg0, %c0_i32, %c0_i32_0, %c0_i32_1 : i32, i32, i32, i32
  }
  func.func @transform_3(%arg0: i32) -> (i32, i32, i32, i32) {
    %c0_i32 = arith.constant 0 : i32
    %c0_i32_0 = arith.constant 0 : i32
    %c0_i32_1 = arith.constant 0 : i32
    %c0_i32_2 = arith.constant 0 : i32
    return %arg0, %c0_i32, %c0_i32_0, %c0_i32_1 : i32, i32, i32, i32
  }
}

</mosaic_0001>

<bundles_post_ra>
// kernel: spp3d_pallas.1
= control target key start
LH: loop header
LB: loop body
LE: loop exit
PB: predicated region body
PF: predicated region fallthrough
CT: control target
= control target key end

     0   :  { %9 = vsyncpa [#allocation3], 0  ;;  %s2465_s0 = inlined_call_operand.hbm [shape: f32[8,8,8,8], index: 0, kind: input, shape index: {}]   ;;  %s2466_s1 = inlined_call_operand.vmem [shape: f32[8,1,1,1], index: 1, kind: output, shape index: {0}]   ;;  %s2467_s2 = inlined_call_operand.vmem [shape: f32[8,2,2,2], index: 2, kind: output, shape index: {1}]   ;;  %s2468_s3 = inlined_call_operand.vmem [shape: f32[8,4,4,4], index: 3, kind: output, shape index: {2}]  }
   0x1   :  { %11 = vsyncpa [#allocation3 + $0x1], 0  ;;  %s1591_s12 = smov 0   ;;  %s1593_s13 = smov 0  }
   0x2   :  { %s1595_s14 = smov 0   ;;  %s1597_s15 = smov 0  }
   0x3 LB: > { %s1438_s16 = sadd.s32 4294967295, %s1566_s15   ;;  %s1611_s17 = sadd.s32 1, %s1566_s15   ;;  %s1566_s15 = sphi %s1597_s15, %s2496_s15   ;;  %s1562_s14 = sphi %s1595_s14, %s2495_s14   ;;  %s1558_s13 = sphi %s1593_s13, %s2494_s13   ;;  %s1554_s12 = sphi %s1591_s12, %s2493_s12  }
   0x4   : > { %s21_s18 = ssub.s32 %s1566_s15, %s1611_s17  ;;  %s24_s19 = sadd.s32 1, %s1562_s14 }
   0x5   : > { %p22_p0 = scmp.eq.s32.totalorder %s21_s18, 0  ;;  %p31_p1 = scmp.ne.s32.totalorder %s1562_s14, %s1558_s13 }
   0x6   : > { %p32_p2 = scmp.eq.s32.totalorder %s1566_s15, 0  ;;  %p37_p3 = scmp.ne.s32.totalorder %s1558_s13, %s1554_s12 }
   0x7   : > { %s1621_s20 = scalar_select %p22_p0, %s1562_s14, %s24_s19  }
   0x8   : > { %p33_p4 = por %p32_p2, %p31_p1  ;;  %p38_p5 = scmp.eq.s32.totalorder %s1438_s16, 0 }
   0x9   : > { %p1467_p6 = scmp.lt.s32.totalorder %s1566_s15, 2  ;;  %s139_s22 = sand.u32 1, %s1562_s14  }
   0xa   : > { %p1626_p7 = por %p38_p5, %p37_p3  ;;  %s1442_s23 = sshll.u32 %s139_s22, 8 }
   0xb   : > { %s1458_s24 = sshll.u32 %s1566_s15, 12  ;;  %s143_s28 = scalar_lea.vmem [#allocation2], %s1442_s23 }
   0xc   : > { %s1635_s27 = scalar_lea.hbm %s2465_s0, %s1458_s24  ;;  %s151_s29 = sshll.u32 %s143_s28, 4  ;;  %s1637_s29 = int_to_ptr.vmem [resolvable:$true] %s151_s29 }
   0xd   : > { %p1639_p8 = pnand %p1467_p6, %p33_p4  ;;  %s1644_s4 = scalar_lea.sflag [#allocation3], %s139_s22 }
   0xe   : > { %s1502_s5 = scalar_lea.hbm %s1635_s27, 4096  ;;  %s1507_s8 = scalar_lea.hbm %s2465_s0, 8192 }
   0xf   : > { %p1503_p10 = scmp.ne.s32.totalorder %s1635_s27, %s1502_s5  ;;  %p1504_p11 = pneg %p1639_p8 }
  0x10   : > { %p1508_p0 = scmp.lt.u32.totalorder %s1635_s27, %s2465_s0  ;;  %p1509_p1 = scmp.lt.u32.totalorder %s1507_s8, %s1502_s5 }
  0x11   : > { %p1505_p12 = pnand %p1504_p11, %p1503_p10  ;;  %p1511_p3 = scmp.lt.u32.totalorder %s1502_s5, %s1635_s27 }
  0x12   : > { %p1510_p2 = por %p1509_p1, %p1508_p0 }
  0x13   : > { %p1506_p13 = pneg %p1505_p12 }
  0x14   : > { %p1512_p4 = por %p1511_p3, %p1510_p2 }
  0x16   : > { %p1513_p5 = pnand %p1512_p4, %p1506_p13 }
  0x18   : > { %1516 = shalt.err (!%p1513_p5)
}
  0x19   : > { %s1517_s11 = scalar_lea.vmem %s1637_s29, 4096  ;;  %s1568_s12 = smov [#allocation2]  }
  0x1a   : > { %p1518_p6 = scmp.ne.s32.totalorder %s1637_s29, %s1517_s11  ;;  %s1522_s18 = sshll.u32 %s1568_s12, 4  ;;  %s1523_s18 = int_to_ptr.vmem [resolvable:$false] %s1522_s18 }
  0x1b   : > { %s1524_s19 = scalar_lea.vmem %s1523_s18, 8192  ;;  %p1525_p9 = scmp.lt.s32.totalorder %s1637_s29, %s1523_s18 }
  0x1c   : > { %p1520_p10 = pnand %p1518_p6, %p1504_p11  ;;  %p1526_p0 = scmp.lt.s32.totalorder %s1524_s19, %s1517_s11 }
  0x1e   : > { %p1521_p12 = pneg %p1520_p10  ;;  %p1527_p1 = por %p1526_p0, %p1525_p9 }
  0x20   : > { %p1528_p2 = pnand %p1527_p1, %p1521_p12 }
  0x22   : > { %1531 = shalt.err (!%p1528_p2)
}
  0x23   : > { %s1569_s22 = smov 128   ;;  %s1570_s23 = smov 8  }
  0x24   : > { %1466 = dma.hbm_to_vmem [thread:$0]  (!%p1639_p8), %s1635_s27, 4096, %s1637_s29, %s1644_s4, %s1569_s22, %s1569_s22, %s1570_s23  }
  0x25   : > { %p159_p11 = scmp.lt.s32.totalorder %s1566_s15, 3  ;;  %p2480_p13 = scmp.ge.s32.totalorder %s1566_s15, 1 }
  0x27   : > { %p160_p3 = pnand %p2480_p13, %p159_p11 }
  0x29   : > { %163 = sbr.rel (%p160_p3) target bundleno = 485 (0x1e5), region = 24 }
  0x30   : > { %s165_s24 = sand.u32 1, %s1558_s13  }
  0x31   : > { %s1447_s25 = sshll.u32 %s165_s24, 8  ;;  %s166_s26 = scalar_lea.sflag [#allocation3], %s165_s24 }
  0x32   : > { %s1676_s28 = scalar_lea.vmem [#allocation2], %s1447_s25 }
  0x33   : > { %1549 = dma.done.wait (%p1626_p7), %s166_s26, 4096  }
  0x34   : > { %1551 = vsyncadd (%p1626_p7), %s166_s26, 4294963200  ;;  %v1683_v0 = vld [vmem:[%s1676_s28 + $0x20] sm:$0xff]  ;;  %v1686_v1 = vld [vmem:[%s1676_s28 + $0x28] sm:$0xff]  ;;  %vm341_vm0 = vcmask 60416   ;;  %vm540_vm1 = vcmask 58368   ;;  %vm398_vm2 = vcmask 64516  }
  0x35   : > { %v1689_v2 = vld [vmem:[%s1676_s28 + $0x30] sm:$0xff]  ;;  %v1692_v3 = vld [vmem:[%s1676_s28 + $0x38] sm:$0xff]  ;;  %v1696_v4 = vmax.f32 %v1683_v0, %v1686_v1  ;;  %v223_v5 = vld [vmem:[%s1676_s28] sm:$0xff]  ;;  %vm653_vm3 = vcmask 60418   ;;  %vm455_vm4 = vcmask 1040384   ;;  %vm464_vm5 = vcmask 25600  }
  0x36   : > { %v224_v6 = vld [vmem:[%s1676_s28 + $0x8] sm:$0xff]  ;;  %v1702_v7 = vmax.f32 %v1689_v2, %v1692_v3  ;;  %v225_v8 = vld [vmem:[%s1676_s28 + $0x10] sm:$0xff]  ;;  %v226_v9 = vld [vmem:[%s1676_s28 + $0x18] sm:$0xff]  ;;  %vm489_vm6 = vcmask 58400   ;;  %vm283_vm7 = vcmask 64512   ;;  %vm766_vm8 = vcmask 62468  }
  0x37   : > { %v1706_v10 = vmax.f32 %v223_v5, %v224_v6  ;;  %v1709_v11 = vld [vmem:[%s1676_s28 + $0x60] sm:$0xff]  ;;  %v333_v12 = vmax.f32 %v1696_v4, %v1689_v2  ;;  %v1713_v13 = vmax.f32 %v225_v8, %v226_v9  ;;  %v1716_v14 = vld [vmem:[%s1676_s28 + $0x68] sm:$0xff]  ;;  %v1719_v15 = vld [vmem:[%s1676_s28 + $0x70] sm:$0xff]  ;;  %v1726_v17 = vsel %vm540_vm1, %v1696_v4, -inf  ;;  %s1448_s21 = sshll.u32 %s1438_s16, 2 }
  0x38   : > { %v1722_v16 = vld [vmem:[%s1676_s28 + $0x78] sm:$0xff]  ;;  %v1730_v18 = vsel %vm653_vm3, %v1696_v4, -inf  ;;  %v1735_v20 = vmax.f32 %v1709_v11, %v1716_v14  ;;  %v231_v22 = vld [vmem:[%s1676_s28 + $0x40] sm:$0xff]  ;;  %v232_v23 = vld [vmem:[%s1676_s28 + $0x48] sm:$0xff]  ;;  %vm879_vm9 = vcmask 64518   ;;  %vm1008_vm10 = vcmask 1041408  }
  0x39   : > { %v259_v19 = vmax.f32 %v1706_v10, %v225_v8  ;;  %v1739_v21 = vmax.f32 %v1719_v15, %v1722_v16  ;;  %v233_v24 = vld [vmem:[%s1676_s28 + $0x50] sm:$0xff]  ;;  %v1746_v25 = vsel %vm540_vm1, %v1706_v10, -inf  ;;  %v337_v26 = vmax.f32 %v333_v12, %v1692_v3  ;;  %v234_v27 = vld [vmem:[%s1676_s28 + $0x58] sm:$0xff]  ;;  %v1753_v29 = vld [vmem:[%s1676_s28 + $0xa0] sm:$0xff]  ;;  %p205_p7 = scmp.lt.s32.totalorder %s1448_s21, 7 }
  0x3a   : > { %v1750_v28 = vmax.f32 %v231_v22, %v232_v23  ;;  %v1756_v30 = vld [vmem:[%s1676_s28 + $0xa8] sm:$0xff]  ;;  %v1760_v31 = vsel %vm540_vm1, %v1713_v13, -inf  ;;  %v1764_v32 = vsel %vm653_vm3, %v1713_v13, -inf  ;;  %v334_v34 = vmax.f32 %v1735_v20, %v1719_v15  ;;  %v1773_v36 = vld [vmem:[%s1676_s28 + $0xb0] sm:$0xff]  ;;  %v1776_v37 = vld [vmem:[%s1676_s28 + $0xb8] sm:$0xff] }
  0x3b   : > { %v1766_v33 = vmax.f32 %v259_v19, %v226_v9  ;;  %v1770_v35 = vmax.f32 %v233_v24, %v234_v27  ;;  %v1780_v38 = vmax.f32 %v1753_v29, %v1756_v30  ;;  %v349_v39 = vsel %vm341_vm0, %v337_v26, -inf  ;;  %v239_v43 = vld [vmem:[%s1676_s28 + $0x80] sm:$0xff]  ;;  %v240_v44 = vld [vmem:[%s1676_s28 + $0x88] sm:$0xff]  ;;  %s2498_s21 = smov (!%p205_p7, %s1448_s21), 7 }
  0x3c   : > { %v406_v40 = vsel %vm398_vm2, %v337_v26, -inf  ;;  %v260_v41 = vmax.f32 %v1750_v28, %v233_v24  ;;  %v1787_v42 = vmax.f32 %v1773_v36, %v1776_v37  ;;  %v350_v45 = vrot.slane %v349_v39, 4  ;;  %s1459_s15 = sshll.u32 %s2498_s21, 2  ;;  %s207_s5 = scalar_lea.vmem %s2466_s1, %s2498_s21 }
  0x3d   : > { %2481 = vst [vmem:[#allocation5_spill] sm:$0xff] %v1780_v38  ;;  %v407_v46 = vrot.slane %v406_v40, 4  ;;  %v342_v47 = vsel %vm341_vm0, %v1766_v33, -inf  ;;  %v399_v48 = vsel %vm398_vm2, %v1766_v33, -inf  ;;  %v338_v51 = vmax.f32 %v334_v34, %v1722_v16  ;;  %s2192_s29 = scalar_lea.vmem %s2467_s2, %s1459_s15  ;;  %s1460_s6 = sshll.u32 %s2498_s21, 4 }
  0x3e   : > { %2482 = vst [vmem:[#allocation6_spill] sm:$0xff] %v1787_v42  ;;  %v343_v49 = vrot.slane %v342_v47, 4  ;;  %v400_v50 = vrot.slane %v399_v48, 4  ;;  %v1796_v52 = vmax.f32 %v260_v41, %v234_v27  ;;  %v351_v53 = vmax.f32 %v349_v39, %v350_v45  ;;  %s2351_s9 = scalar_lea.vmem %s2468_s3, %s1460_s6 }
  0x3f   : > { %v408_v54 = vmax.f32 %v406_v40, %v407_v46  ;;  %v335_v55 = vmax.f32 %v1780_v38, %v1773_v36  ;;  %v1800_v56 = vmax.f32 %v239_v43, %v240_v44  ;;  %v363_v59 = vsel %vm341_vm0, %v338_v51, -inf }
  0x40   : > { %v344_v57 = vmax.f32 %v342_v47, %v343_v49  ;;  %v401_v58 = vmax.f32 %v399_v48, %v400_v50  ;;  %v420_v60 = vsel %vm398_vm2, %v338_v51, -inf  ;;  %v352_v61 = vrot.slane %v351_v53, 2 }
  0x41   : > { %v409_v62 = vrot.slane %v408_v54, 2  ;;  %v364_v63 = vrot.slane %v363_v59, 4  ;;  %v421_v5 = vrot.slane %v420_v60, 4  ;;  %v356_v9 = vsel %vm341_vm0, %v1796_v52, -inf }
  0x42   : > { %v345_v6 = vrot.slane %v344_v57, 2  ;;  %v402_v8 = vrot.slane %v401_v58, 2  ;;  %v413_v12 = vsel %vm398_vm2, %v1796_v52, -inf  ;;  %v353_v19 = vmax.f32 %v351_v53, %v352_v61 }
  0x43   : > { %v410_v22 = vmax.f32 %v408_v54, %v409_v62  ;;  %v365_v23 = vmax.f32 %v363_v59, %v364_v63  ;;  %v422_v24 = vmax.f32 %v420_v60, %v421_v5  ;;  %v357_v34 = vrot.slane %v356_v9, 4 }
  0x44   : > { %v346_v26 = vmax.f32 %v344_v57, %v345_v6  ;;  %v403_v27 = vmax.f32 %v401_v58, %v402_v8  ;;  %v414_v39 = vrot.slane %v413_v12, 4  ;;  %v354_v40 = vrot.slane %v353_v19, 1 }
  0x45   : > { %v411_v41 = vrot.slane %v410_v22, 1  ;;  %v366_v43 = vrot.slane %v365_v23, 2  ;;  %v423_v44 = vrot.slane %v422_v24, 2  ;;  %v358_v47 = vmax.f32 %v356_v9, %v357_v34 }
  0x46   : > { %v347_v45 = vrot.slane %v346_v26, 1  ;;  %v404_v46 = vrot.slane %v403_v27, 1  ;;  %v415_v48 = vmax.f32 %v413_v12, %v414_v39  ;;  %v355_v49 = vmax.f32 %v353_v19, %v354_v40  ;;  %v241_v12 = vld [vmem:[%s1676_s28 + $0x90] sm:$0xff]  ;;  %v1818_v40 = vld [vmem:[%s1676_s28 + $0xe0] sm:$0xff] }
  0x47   : > { %v412_v50 = vmax.f32 %v410_v22, %v411_v41  ;;  %v367_v51 = vmax.f32 %v365_v23, %v366_v43  ;;  %v424_v53 = vmax.f32 %v422_v24, %v423_v44  ;;  %v359_v60 = vrot.slane %v358_v47, 2  ;;  %v1821_v41 = vld [vmem:[%s1676_s28 + $0xe8] sm:$0xff] }
  0x48   : > { %v348_v54 = vmax.f32 %v346_v26, %v347_v45  ;;  %v405_v59 = vmax.f32 %v403_v27, %v404_v46  ;;  %v416_v57 = vrot.slane %v415_v48, 2  ;;  %v339_v63 = vmax.f32 %v335_v55, %v1776_v37  ;;  %v242_v26 = vld [vmem:[%s1676_s28 + $0x98] sm:$0xff] }
  0x49   : > { %v457_v58 = vsel %vm455_vm4, %v355_v49, %v412_v50  ;;  %v368_v61 = vrot.slane %v367_v51, 1  ;;  %v425_v62 = vrot.slane %v424_v53, 1  ;;  %v360_v8 = vmax.f32 %v358_v47, %v359_v60  ;;  %v247_v47 = vld [vmem:[%s1676_s28 + $0xc0] sm:$0xff] }
  0x4a   : > { %v468_v5 = vsel %vm464_vm5, %v457_v58, -inf  ;;  %v456_v6 = vsel %vm455_vm4, %v348_v54, %v405_v59  ;;  %v417_v9 = vmax.f32 %v415_v48, %v416_v57  ;;  %v377_v24 = vsel %vm341_vm0, %v339_v63, -inf  ;;  %v248_v48 = vld [vmem:[%s1676_s28 + $0xc8] sm:$0xff]  ;;  %v1831_v54 = vld [vmem:[%s1676_s28 + $0xf0] sm:$0xff]  ;;  %v1834_v59 = vld [vmem:[%s1676_s28 + $0xf8] sm:$0xff] }
  0x4b   : > { %469 = vmax.xlane.f32.xlu1 %v468_v5  ;;  %v465_v19 = vsel %vm464_vm5, %v456_v6, -inf  ;;  %v369_v22 = vmax.f32 %v367_v51, %v368_v61  ;;  %v426_v23 = vmax.f32 %v424_v53, %v425_v62  ;;  %v361_v55 = vrot.slane %v360_v8, 1  ;;  %v250_v5 = vld [vmem:[%s1676_s28 + $0xd8] sm:$0xff] }
  0x4c   : > { %466 = vmax.xlane.f32.xlu0 %v465_v19  ;;  %v418_v27 = vrot.slane %v417_v9, 1  ;;  %v378_v34 = vrot.slane %v377_v24, 4  ;;  %v434_v39 = vsel %vm398_vm2, %v339_v63, -inf  ;;  %v261_v45 = vmax.f32 %v1800_v56, %v241_v12  ;;  %v249_v63 = vld [vmem:[%s1676_s28 + $0xd0] sm:$0xff] }
  0x4d   : > { %v459_v43 = vsel %vm455_vm4, %v369_v22, %v426_v23  ;;  %v435_v44 = vrot.slane %v434_v39, 4  ;;  %v1825_v46 = vmax.f32 %v241_v12, %v242_v26  ;;  %v362_v50 = vmax.f32 %v360_v8, %v361_v55 }
  0x4e   : > { %v474_v49 = vsel %vm464_vm5, %v459_v43, -inf  ;;  %v419_v51 = vmax.f32 %v417_v9, %v418_v27  ;;  %v379_v53 = vmax.f32 %v377_v24, %v378_v34  ;;  %v265_v57 = vmax.f32 %v261_v45, %v242_v26 }
  0x4f   : > { %475 = vmax.xlane.f32.xlu1 %v474_v49  ;;  %v436_v60 = vmax.f32 %v434_v39, %v435_v44  ;;  %v1838_v61 = vmax.f32 %v1818_v40, %v1821_v41  ;;  %v1842_v62 = vmax.f32 %v1831_v54, %v1834_v59  ;;  %v1847_v12 = vmax.f32 %v247_v47, %v248_v48 }
  0x50   : > { %v458_v8 = vsel %vm455_vm4, %v362_v50, %v419_v51  ;;  %v380_v9 = vrot.slane %v379_v53, 2  ;;  %v1849_v19 = vmax.f32 %v249_v63, %v250_v5  ;;  %v370_v24 = vsel %vm341_vm0, %v265_v57, -inf }
  0x51   : > { %2483 = vst [vmem:[#allocation7_spill] sm:$0xff] %v1838_v61  ;;  %2484 = vst [vmem:[#allocation8_spill] sm:$0xff] %v1842_v62  ;;  %v471_v22 = vsel %vm464_vm5, %v458_v8, -inf  ;;  %v437_v23 = vrot.slane %v436_v60, 2  ;;  %v427_v26 = vsel %vm398_vm2, %v265_v57, -inf  ;;  %v371_v27 = vrot.slane %v370_v24, 4 }
  0x52   : > { %2485 = vst [vmem:[#allocation9_spill] sm:$0xff] %v1847_v12  ;;  %2486 = vst [vmem:[#allocation10_spill] sm:$0xff] %v1849_v19  ;;  %472 = vmax.xlane.f32.xlu0 %v471_v22  ;;  %v381_v55 = vmax.f32 %v379_v53, %v380_v9  ;;  %v428_v34 = vrot.slane %v427_v26, 4  ;;  %v336_v39 = vmax.f32 %v1838_v61, %v1831_v54  ;;  %v1858_v47 = vsel %vm489_vm6, %v457_v58, -inf }
  0x53   : > { %v438_v44 = vmax.f32 %v436_v60, %v437_v23  ;;  %v262_v45 = vmax.f32 %v1847_v12, %v249_v63  ;;  %v1861_v48 = vsel %vm489_vm6, %v456_v6, -inf  ;;  %v372_v50 = vmax.f32 %v370_v24, %v371_v27 }
  0x54   : > { %v382_v49 = vrot.slane %v381_v55, 1  ;;  %v429_v51 = vmax.f32 %v427_v26, %v428_v34  ;;  %v340_v22 = vmax.f32 %v336_v39, %v1834_v59  ;;  %v1865_v62 = vsel %vm489_vm6, %v459_v43, -inf }
  0x55   : > { %v439_v53 = vrot.slane %v438_v44, 1  ;;  %v266_v9 = vmax.f32 %v262_v45, %v250_v5  ;;  %v1868_v60 = vsel %vm489_vm6, %v458_v8, -inf  ;;  %v373_v23 = vrot.slane %v372_v50, 2 }
  0x56   : > { %v383_v63 = vmax.f32 %v381_v55, %v382_v49  ;;  %v430_v58 = vrot.slane %v429_v51, 2  ;;  %v391_v61 = vsel %vm341_vm0, %v340_v22, -inf  ;;  %v448_v24 = vsel %vm398_vm2, %v340_v22, -inf }
  0x57   : > { %v440_v6 = vmax.f32 %v438_v44, %v439_v53  ;;  %v392_v12 = vrot.slane %v391_v61, 4  ;;  %v384_v26 = vsel %vm341_vm0, %v266_v9, -inf  ;;  %v374_v27 = vmax.f32 %v372_v50, %v373_v23 }
  0x58   : > { %v431_v5 = vmax.f32 %v429_v51, %v430_v58  ;;  %v449_v34 = vrot.slane %v448_v24, 4  ;;  %v385_v43 = vrot.slane %v384_v26, 4  ;;  %v441_v55 = vsel %vm398_vm2, %v266_v9, -inf }
  0x59   : > { %v461_v39 = vsel %vm455_vm4, %v383_v63, %v440_v6  ;;  %v393_v8 = vmax.f32 %v391_v61, %v392_v12  ;;  %v269_v45 = vmax.f32 %v265_v57, %v1753_v29  ;;  %v375_v44 = vrot.slane %v374_v27, 1 }
  0x5a   : > { %v480_v49 = vsel %vm464_vm5, %v461_v39, -inf  ;;  %v432_v53 = vrot.slane %v431_v5, 1  ;;  %v450_v19 = vmax.f32 %v448_v24, %v449_v34  ;;  %v386_v38 = vmax.f32 %v384_v26, %v385_v43 }
  0x5b   : > { %481 = vmax.xlane.f32.xlu1 %v480_v49  ;;  %v394_v22 = vrot.slane %v393_v8, 2  ;;  %v442_v42 = vrot.slane %v441_v55, 4  ;;  %v1878_v50 = vsel %vm489_vm6, %v461_v39, -inf  ;;  %v376_v51 = vmax.f32 %v374_v27, %v375_v44 }
  0x5c   : > { %v433_v23 = vmax.f32 %v431_v5, %v432_v53  ;;  %v451_v63 = vrot.slane %v450_v19, 2  ;;  %v273_v61 = vmax.f32 %v269_v45, %v1756_v30  ;;  %v387_v58 = vrot.slane %v386_v38, 2 }
  0x5d   : > { %v395_v12 = vmax.f32 %v393_v8, %v394_v22  ;;  %v443_v29 = vmax.f32 %v441_v55, %v442_v42  ;;  %v267_v57 = vmax.f32 %v1766_v33, %v1683_v0  ;;  %v270_v34 = vmax.f32 %v266_v9, %v1818_v40 }
  0x5e   : > { %v460_v6 = vsel %vm455_vm4, %v376_v51, %v433_v23  ;;  %v452_v24 = vmax.f32 %v450_v19, %v451_v63  ;;  %v277_v26 = vmax.f32 %v273_v61, %v1773_v36  ;;  %v388_v5 = vmax.f32 %v386_v38, %v387_v58 }
  0x5f   : > { %v477_v43 = vsel %vm464_vm5, %v460_v6, -inf  ;;  %v396_v27 = vrot.slane %v395_v12, 1  ;;  %v444_v39 = vrot.slane %v443_v29, 2  ;;  %v1888_v42 = vsel %vm489_vm6, %v460_v6, -inf }
  0x60   : > { %478 = vmax.xlane.f32.xlu0 %v477_v43  ;;  %v453_v30 = vrot.slane %v452_v24, 1  ;;  %v281_v0 = vmax.f32 %v277_v26, %v1776_v37  ;;  %v271_v33 = vmax.f32 %v267_v57, %v1686_v1  ;;  %v389_v36 = vrot.slane %v388_v5, 1 }
  0x61   : > { %v397_v19 = vmax.f32 %v395_v12, %v396_v27  ;;  %v445_v8 = vmax.f32 %v443_v29, %v444_v39  ;;  %v274_v40 = vmax.f32 %v270_v34, %v1821_v41  ;;  %v268_v45 = vmax.f32 %v1796_v52, %v1709_v11 }
  0x62   : > { %v454_v9 = vmax.f32 %v452_v24, %v453_v30  ;;  %v298_v38 = vsel %vm283_vm7, %v281_v0, -inf  ;;  %v275_v55 = vmax.f32 %v271_v33, %v1689_v2  ;;  %v390_v49 = vmax.f32 %v388_v5, %v389_v36 }
  0x63   : > { %v446_v44 = vrot.slane %v445_v8, 1  ;;  %v299_v53 = vrot.slane %v298_v38, 4  ;;  %v278_v37 = vmax.f32 %v274_v40, %v1831_v54  ;;  %v272_v51 = vmax.f32 %v268_v45, %v1716_v14 }
  0x64   : > { %v463_v1 = vsel %vm455_vm4, %v397_v19, %v454_v9  ;;  %v279_v22 = vmax.f32 %v275_v55, %v1692_v3  ;;  %v549_v41 = vrot.slane %v1760_v31, 4  ;;  %v662_v29 = vrot.slane %v1764_v32, 4 }
  0x65   : > { %v486_v23 = vsel %vm464_vm5, %v463_v1, -inf  ;;  %v447_v63 = vmax.f32 %v445_v8, %v446_v44  ;;  %v1904_v2 = vsel %vm489_vm6, %v463_v1, -inf  ;;  %v300_v11 = vmax.f32 %v298_v38, %v299_v53 }
  0x66   : > { %487 = vmax.xlane.f32.xlu1 %v486_v23  ;;  %v284_v52 = vsel %vm283_vm7, %v279_v22, -inf  ;;  %v282_v54 = vmax.f32 %v278_v37, %v1834_v59  ;;  %v276_v61 = vmax.f32 %v272_v51, %v1719_v15  ;;  %v550_v3 = vmax.f32 %v1760_v31, %v549_v41 }
  0x67   : > { %v462_v14 = vsel %vm455_vm4, %v390_v49, %v447_v63  ;;  %v301_v12 = vrot.slane %v300_v11, 2  ;;  %v285_v58 = vrot.slane %v284_v52, 4  ;;  %v663_v27 = vmax.f32 %v1764_v32, %v662_v29 }
  0x68   : > { %v483_v57 = vsel %vm464_vm5, %v462_v14, -inf  ;;  %v1914_v6 = vsel %vm489_vm6, %v462_v14, -inf  ;;  %v305_v24 = vsel %vm283_vm7, %v282_v54, -inf  ;;  %v280_v26 = vmax.f32 %v276_v61, %v1722_v16 }
  0x69   : > { %484 = vmax.xlane.f32.xlu0 %v483_v57  ;;  %v302_v59 = vmax.f32 %v300_v11, %v301_v12  ;;  %v286_v15 = vmax.f32 %v284_v52, %v285_v58  ;;  %v306_v34 = vrot.slane %v305_v24, 4  ;;  %v551_v31 = vrot.slane %v550_v3, 2 }
  0x6a   : > { %494 = vmax.xlane.f32.xlu1 %v1858_v47  ;;  %v291_v43 = vsel %vm283_vm7, %v280_v26, -inf  ;;  %v774_v5 = vsel %vm766_vm8, %v1713_v13, -inf  ;;  %v887_v39 = vsel %vm879_vm9, %v1713_v13, -inf  ;;  %v664_v36 = vrot.slane %v663_v27, 2 }
  0x6b   : > { %v303_v30 = vrot.slane %v302_v59, 1  ;;  %v287_v0 = vrot.slane %v286_v15, 2  ;;  %v307_v16 = vmax.f32 %v305_v24, %v306_v34  ;;  %v292_v33 = vrot.slane %v291_v43, 4 }
  0x6c   : > { %v552_v19 = vmax.f32 %v550_v3, %v551_v31  ;;  %v775_v8 = vrot.slane %v774_v5, 4  ;;  %v888_v40 = vrot.slane %v887_v39, 4  ;;  %v665_v45 = vmax.f32 %v663_v27, %v664_v36 }
  0x6d   : > { %491 = vmax.xlane.f32.xlu0 %v1861_v48  ;;  %v304_v47 = vmax.f32 %v302_v59, %v303_v30  ;;  %v288_v9 = vmax.f32 %v286_v15, %v287_v0  ;;  %v308_v38 = vrot.slane %v307_v16, 2  ;;  %v293_v32 = vmax.f32 %v291_v43, %v292_v33 }
  0x6e   : > { %500 = vmax.xlane.f32.xlu1 %v1865_v62  ;;  %v553_v55 = vrot.slane %v552_v19, 1  ;;  %v776_v13 = vmax.f32 %v774_v5, %v775_v8  ;;  %v889_v49 = vmax.f32 %v887_v39, %v888_v40  ;;  %vm1025_vm11 = vcmask 1042432  }
  0x6f   : > { %v318_v44 = vsel %vm283_vm7, %v304_v47, -inf  ;;  %v289_v53 = vrot.slane %v288_v9, 1  ;;  %v309_v37 = vmax.f32 %v307_v16, %v308_v38  ;;  %v294_v1 = vrot.slane %v293_v32, 2 }
  0x70   : > { %vm1042_vm12 = vcmask 11264   ;;  %v554_v22 = vmax.f32 %v552_v19, %v553_v55  ;;  %v666_v48 = vrot.slane %v665_v45, 1  ;;  %v777_v51 = vrot.slane %v776_v13, 2 }
  0x71   : > { %v890_v41 = vrot.slane %v889_v49, 2  ;;  %497 = vmax.xlane.f32.xlu0 %v1868_v60  ;;  %v290_v23 = vmax.f32 %v288_v9, %v289_v53  ;;  %v310_v63 = vrot.slane %v309_v37, 1  ;;  %v295_v62 = vmax.f32 %v293_v32, %v294_v1 }
  0x72   : > { %v542_v11 = vrot.slane %v1746_v25, 4  ;;  %506 = vmax.xlane.f32.xlu1 %v1878_v50  ;;  %v667_v52 = vmax.f32 %v665_v45, %v666_v48  ;;  %v778_v54 = vmax.f32 %v776_v13, %v777_v51  ;;  %v654_v3 = vsel %vm653_vm3, %v1706_v10, -inf }
  0x73   : > { %v891_v61 = vmax.f32 %v889_v49, %v890_v41  ;;  %v312_v14 = vsel %vm283_vm7, %v290_v23, -inf  ;;  %v311_v12 = vmax.f32 %v309_v37, %v310_v63  ;;  %v296_v58 = vrot.slane %v295_v62, 1 }
  0x74   : > { %v543_v29 = vmax.f32 %v1746_v25, %v542_v11  ;;  %v779_v60 = vrot.slane %v778_v54, 1  ;;  %v993_v24 = vsel %vm455_vm4, %v554_v22, %v667_v52  ;;  %v655_v26 = vrot.slane %v654_v3, 4 }
  0x75   : > { %v892_v57 = vrot.slane %v891_v61, 1  ;;  %503 = vmax.xlane.f32.xlu0 %v1888_v42  ;;  %v321_v50 = vsel %vm283_vm7, %v311_v12, -inf  ;;  %v297_v59 = vmax.f32 %v295_v62, %v296_v58  ;;  %v767_v34 = vsel %vm766_vm8, %v1706_v10, -inf }
  0x76   : > { %v544_v15 = vrot.slane %v543_v29, 2  ;;  %512 = vmax.xlane.f32.xlu1 %v1904_v2  ;;  %v780_v31 = vmax.f32 %v778_v54, %v779_v60  ;;  %v656_v27 = vmax.f32 %v654_v3, %v655_v26  ;;  %v768_v25 = vrot.slane %v767_v34, 4 }
  0x77   : > { %v893_v43 = vmax.f32 %v891_v61, %v892_v57  ;;  %v315_v5 = vsel %vm283_vm7, %v297_v59, -inf  ;;  %v880_v30 = vsel %vm879_vm9, %v1706_v10, -inf  ;;  %v562_v42 = vsel %vm540_vm1, %v1702_v7, -inf }
  0x78   : > { %v545_v39 = vmax.f32 %v543_v29, %v544_v15  ;;  %v1010_v0 = vsel %vm1008_vm10, %v993_v24, %v780_v31  ;;  %v657_v16 = vrot.slane %v656_v27, 2  ;;  %v769_v33 = vmax.f32 %v767_v34, %v768_v25 }
  0x79   : > { %v881_v19 = vrot.slane %v880_v30, 4  ;;  %509 = vmax.xlane.f32.xlu0 %v1914_v6  ;;  %v1949_v2 = vsel %vm1025_vm11, %v1010_v0, %v893_v43  ;;  %v563_v8 = vrot.slane %v562_v42, 4  ;;  %v675_v40 = vsel %vm653_vm3, %v1702_v7, -inf }
  0x7a   : > { %v546_v36 = vrot.slane %v545_v39, 1  ;;  %319 = vmax.xlane.f32.xlu1 %v318_v44  ;;  %v1046_v10 = vsel %vm1042_vm12, %v1949_v2, -inf  ;;  %v658_v47 = vmax.f32 %v656_v27, %v657_v16  ;;  %v770_v9 = vrot.slane %v769_v33, 2 }
  0x7b   : > { %v882_v38 = vmax.f32 %v880_v30, %v881_v19  ;;  %v564_v55 = vmax.f32 %v562_v42, %v563_v8  ;;  %v676_v45 = vrot.slane %v675_v40, 4  ;;  %v788_v6 = vsel %vm766_vm8, %v1702_v7, -inf }
  0x7c   : > { %v547_v32 = vmax.f32 %v545_v39, %v546_v36  ;;  %v659_v13 = vrot.slane %v658_v47, 1  ;;  %v771_v49 = vmax.f32 %v769_v33, %v770_v9  ;;  %v789_v37 = vrot.slane %v788_v6, 4 }
  0x7d   : > { %v883_v53 = vrot.slane %v882_v38, 2  ;;  %313 = vmax.xlane.f32.xlu0 %v312_v14  ;;  %v565_v1 = vrot.slane %v564_v55, 2  ;;  %v677_v22 = vmax.f32 %v675_v40, %v676_v45  ;;  %v901_v44 = vsel %vm879_vm9, %v1702_v7, -inf }
  0x7e   : > { %v556_v48 = vrot.slane %v1726_v17, 4  ;;  %322 = vmax.xlane.f32.xlu1 %v321_v50  ;;  %v660_v51 = vmax.f32 %v658_v47, %v659_v13  ;;  %v772_v41 = vrot.slane %v771_v49, 1  ;;  %v790_v63 = vmax.f32 %v788_v6, %v789_v37 }
  0x7f   : > { %v884_v23 = vmax.f32 %v882_v38, %v883_v53  ;;  %v566_v62 = vmax.f32 %v564_v55, %v565_v1  ;;  %v678_v11 = vrot.slane %v677_v22, 2  ;;  %v902_v52 = vrot.slane %v901_v44, 4 }
  0x80   : > { %v557_v54 = vmax.f32 %v1726_v17, %v556_v48  ;;  %v773_v61 = vmax.f32 %v771_v49, %v772_v41  ;;  %v992_v14 = vsel %vm455_vm4, %v547_v32, %v660_v51  ;;  %v791_v12 = vrot.slane %v790_v63, 2 }
  0x81   : > { %v885_v3 = vrot.slane %v884_v23, 1  ;;  %316 = vmax.xlane.f32.xlu0 %v315_v5  ;;  %v567_v58 = vrot.slane %v566_v62, 1  ;;  %v679_v7 = vmax.f32 %v677_v22, %v678_v11  ;;  %v903_v29 = vmax.f32 %v901_v44, %v902_v52 }
  0x82   : > { %v558_v60 = vrot.slane %v557_v54, 2  ;;  %1047 = vmax.xlane.f32.xlu1 %v1046_v10  ;;  %v1009_v24 = vsel %vm1008_vm10, %v992_v14, %v773_v61  ;;  %v792_v26 = vmax.f32 %v790_v63, %v791_v12  ;;  %v669_v50 = vrot.slane %v1730_v18, 4 }
  0x83   : > { %v886_v57 = vmax.f32 %v884_v23, %v885_v3  ;;  %v568_v59 = vmax.f32 %v566_v62, %v567_v58  ;;  %v680_v15 = vrot.slane %v679_v7, 1  ;;  %v904_v17 = vrot.slane %v903_v29, 2 }
  0x84   : > { %v559_v34 = vmax.f32 %v557_v54, %v558_v60  ;;  %v793_v43 = vrot.slane %v792_v26, 1  ;;  %v670_v27 = vmax.f32 %v1730_v18, %v669_v50  ;;  %v781_v25 = vsel %vm766_vm8, %v1696_v4, -inf }
  0x85   : > { %v1965_v31 = vsel %vm1025_vm11, %v1009_v24, %v886_v57  ;;  %v681_v39 = vmax.f32 %v679_v7, %v680_v15  ;;  %v905_v30 = vmax.f32 %v903_v29, %v904_v17  ;;  %v782_v33 = vrot.slane %v781_v25, 4 }
  0x86   : > { %v1043_v5 = vsel %vm1042_vm12, %v1965_v31, -inf  ;;  %v560_v42 = vrot.slane %v559_v34, 1  ;;  %v794_v0 = vmax.f32 %v792_v26, %v793_v43  ;;  %v671_v16 = vrot.slane %v670_v27, 2 }
  0x87   : > { %1044 = vmax.xlane.f32.xlu0 %v1043_v5  ;;  %v894_v19 = vsel %vm879_vm9, %v1696_v4, -inf  ;;  %v906_v36 = vrot.slane %v905_v30, 1  ;;  %v995_v8 = vsel %vm455_vm4, %v568_v59, %v681_v39  ;;  %v783_v9 = vmax.f32 %v781_v25, %v782_v33 }
  0x88   : > { %v561_v18 = vmax.f32 %v559_v34, %v560_v42  ;;  %v895_v40 = vrot.slane %v894_v19, 4  ;;  %v1012_v10 = vsel %vm1008_vm10, %v995_v8, %v794_v0  ;;  %v672_v47 = vmax.f32 %v670_v27, %v671_v16 }
  0x89   : > { %v576_v38 = vsel %vm540_vm1, %v1770_v35, -inf  ;;  %v907_v32 = vmax.f32 %v905_v30, %v906_v36  ;;  %v689_v6 = vsel %vm653_vm3, %v1770_v35, -inf  ;;  %v784_v4 = vrot.slane %v783_v9, 2 }
  0x8a   : > { %v896_v55 = vmax.f32 %v894_v19, %v895_v40  ;;  %v577_v45 = vrot.slane %v576_v38, 4  ;;  %v673_v13 = vrot.slane %v672_v47, 1  ;;  %v690_v49 = vrot.slane %v689_v6, 4 }
  0x8b   : > { %v802_v53 = vsel %vm766_vm8, %v1770_v35, -inf  ;;  %v1983_v37 = vsel %vm1025_vm11, %v1012_v10, %v907_v32  ;;  %v785_v41 = vmax.f32 %v783_v9, %v784_v4  ;;  %v915_v52 = vsel %vm879_vm9, %v1770_v35, -inf }
  0x8c   : > { %v897_v1 = vrot.slane %v896_v55, 2  ;;  %v578_v22 = vmax.f32 %v576_v38, %v577_v45  ;;  %v803_v44 = vrot.slane %v802_v53, 4  ;;  %v1052_v48 = vsel %vm1042_vm12, %v1983_v37, -inf }
  0x8d   : > { %v674_v51 = vmax.f32 %v672_v47, %v673_v13  ;;  %v691_v23 = vmax.f32 %v689_v6, %v690_v49  ;;  %1053 = vmax.xlane.f32.xlu1 %v1052_v48  ;;  %v786_v54 = vrot.slane %v785_v41, 1  ;;  %v916_v14 = vrot.slane %v915_v52, 4 }
  0x8e   : > { %v898_v63 = vmax.f32 %v896_v55, %v897_v1  ;;  %v579_v62 = vrot.slane %v578_v22, 2  ;;  %v804_v11 = vmax.f32 %v802_v53, %v803_v44  ;;  %v569_v29 = vsel %vm540_vm1, %v1750_v28, -inf }
  0x8f   : > { %v994_v61 = vsel %vm455_vm4, %v561_v18, %v674_v51  ;;  %v692_v3 = vrot.slane %v691_v23, 2  ;;  %v787_v60 = vmax.f32 %v785_v41, %v786_v54  ;;  %v917_v24 = vmax.f32 %v915_v52, %v916_v14 }
  0x90   : > { %v899_v12 = vrot.slane %v898_v63, 1  ;;  %v580_v58 = vmax.f32 %v578_v22, %v579_v62  ;;  %v805_v7 = vrot.slane %v804_v11, 2  ;;  %v570_v26 = vrot.slane %v569_v29, 4 }
  0x91   : > { %v693_v57 = vmax.f32 %v691_v23, %v692_v3  ;;  %v682_v35 = vsel %vm653_vm3, %v1750_v28, -inf  ;;  %v1011_v17 = vsel %vm1008_vm10, %v994_v61, %v787_v60  ;;  %v918_v43 = vrot.slane %v917_v24, 2 }
  0x92   : > { %v900_v50 = vmax.f32 %v898_v63, %v899_v12  ;;  %v581_v59 = vrot.slane %v580_v58, 1  ;;  %v806_v15 = vmax.f32 %v804_v11, %v805_v7  ;;  %v571_v27 = vmax.f32 %v569_v29, %v570_v26 }
  0x93   : > { %v694_v34 = vrot.slane %v693_v57, 1  ;;  %v683_v30 = vrot.slane %v682_v35, 4  ;;  %v919_v16 = vmax.f32 %v917_v24, %v918_v43  ;;  %v795_v8 = vsel %vm766_vm8, %v1750_v28, -inf }
  0x94   : > { %v1996_v25 = vsel %vm1025_vm11, %v1011_v17, %v900_v50  ;;  %v582_v5 = vmax.f32 %v580_v58, %v581_v59  ;;  %v807_v39 = vrot.slane %v806_v15, 1  ;;  %v572_v33 = vrot.slane %v571_v27, 2 }
  0x95   : > { %v1049_v42 = vsel %vm1042_vm12, %v1996_v25, -inf  ;;  %v695_v0 = vmax.f32 %v693_v57, %v694_v34  ;;  %v684_v36 = vmax.f32 %v682_v35, %v683_v30  ;;  %v908_v18 = vsel %vm879_vm9, %v1750_v28, -inf }
  0x96   : > { %1050 = vmax.xlane.f32.xlu0 %v1049_v42  ;;  %v808_v19 = vmax.f32 %v806_v15, %v807_v39  ;;  %v920_v40 = vrot.slane %v919_v16, 1  ;;  %v573_v47 = vmax.f32 %v571_v27, %v572_v33  ;;  %v796_v9 = vrot.slane %v795_v8, 4 }
  0x97   : > { %v997_v10 = vsel %vm455_vm4, %v582_v5, %v695_v0  ;;  %v685_v32 = vrot.slane %v684_v36, 2  ;;  %v909_v55 = vrot.slane %v908_v18, 4  ;;  %v590_v45 = vsel %vm540_vm1, %v1739_v21, -inf }
  0x98   : > { %v1014_v38 = vsel %vm1008_vm10, %v997_v10, %v808_v19  ;;  %v921_v6 = vmax.f32 %v919_v16, %v920_v40  ;;  %v574_v13 = vrot.slane %v573_v47, 1  ;;  %v797_v4 = vmax.f32 %v795_v8, %v796_v9 }
  0x99   : > { %v591_v49 = vrot.slane %v590_v45, 4  ;;  %v686_v53 = vmax.f32 %v684_v36, %v685_v32  ;;  %v910_v1 = vmax.f32 %v908_v18, %v909_v55  ;;  %v703_v28 = vsel %vm653_vm3, %v1739_v21, -inf }
  0x9a   : > { %v816_v22 = vsel %vm766_vm8, %v1739_v21, -inf  ;;  %v2013_v44 = vsel %vm1025_vm11, %v1014_v38, %v921_v6  ;;  %v575_v48 = vmax.f32 %v573_v47, %v574_v13  ;;  %v798_v51 = vrot.slane %v797_v4, 2 }
  0x9b   : > { %v592_v41 = vmax.f32 %v590_v45, %v591_v49  ;;  %v1058_v23 = vsel %vm1042_vm12, %v2013_v44, -inf  ;;  %v687_v63 = vrot.slane %v686_v53, 1  ;;  %v911_v62 = vrot.slane %v910_v1, 2 }
  0x9c   : > { %v704_v11 = vrot.slane %v703_v28, 4  ;;  %1059 = vmax.xlane.f32.xlu1 %v1058_v23  ;;  %v799_v52 = vmax.f32 %v797_v4, %v798_v51  ;;  %v817_v61 = vrot.slane %v816_v22, 4  ;;  %v929_v3 = vsel %vm879_vm9, %v1739_v21, -inf }
  0x9d   : > { %v593_v54 = vrot.slane %v592_v41, 2  ;;  %v688_v14 = vmax.f32 %v686_v53, %v687_v63  ;;  %v912_v12 = vmax.f32 %v910_v1, %v911_v62  ;;  %v930_v7 = vrot.slane %v929_v3, 4 }
  0x9e   : > { %v705_v58 = vmax.f32 %v703_v28, %v704_v11  ;;  %v800_v29 = vrot.slane %v799_v52, 1  ;;  %v818_v57 = vmax.f32 %v816_v22, %v817_v61  ;;  %v583_v24 = vsel %vm540_vm1, %v1735_v20, -inf }
  0x9f   : > { %v594_v60 = vmax.f32 %v592_v41, %v593_v54  ;;  %v913_v26 = vrot.slane %v912_v12, 1  ;;  %v996_v50 = vsel %vm455_vm4, %v575_v48, %v688_v14  ;;  %v931_v15 = vmax.f32 %v929_v3, %v930_v7 }
  0xa0   : > { %v706_v59 = vrot.slane %v705_v58, 2  ;;  %v801_v35 = vmax.f32 %v799_v52, %v800_v29  ;;  %v819_v34 = vrot.slane %v818_v57, 2  ;;  %v584_v43 = vrot.slane %v583_v24, 4 }
  0xa1   : > { %v595_v17 = vrot.slane %v594_v60, 1  ;;  %v914_v21 = vmax.f32 %v912_v12, %v913_v26  ;;  %v932_v5 = vrot.slane %v931_v15, 2  ;;  %v696_v39 = vsel %vm653_vm3, %v1735_v20, -inf }
  0xa2   : > { %v707_v27 = vmax.f32 %v705_v58, %v706_v59  ;;  %v1013_v30 = vsel %vm1008_vm10, %v996_v50, %v801_v35  ;;  %v820_v0 = vmax.f32 %v818_v57, %v819_v34  ;;  %v585_v16 = vmax.f32 %v583_v24, %v584_v43 }
  0xa3   : > { %v596_v42 = vmax.f32 %v594_v60, %v595_v17  ;;  %v2026_v33 = vsel %vm1025_vm11, %v1013_v30, %v914_v21  ;;  %v933_v36 = vmax.f32 %v931_v15, %v932_v5  ;;  %v697_v8 = vrot.slane %v696_v39, 4 }
  0xa4   : > { %v708_v19 = vrot.slane %v707_v27, 1  ;;  %v1055_v18 = vsel %vm1042_vm12, %v2026_v33, -inf  ;;  %v821_v40 = vrot.slane %v820_v0, 1  ;;  %v586_v10 = vrot.slane %v585_v16, 2 }
  0xa5   : > { %v809_v47 = vsel %vm766_vm8, %v1735_v20, -inf  ;;  %1056 = vmax.xlane.f32.xlu0 %v1055_v18  ;;  %v934_v38 = vrot.slane %v933_v36, 1  ;;  %v698_v32 = vmax.f32 %v696_v39, %v697_v8  ;;  %v922_v13 = vsel %vm879_vm9, %v1735_v20, -inf }
  0xa6   : > { %v709_v9 = vmax.f32 %v707_v27, %v708_v19  ;;  %v810_v55 = vrot.slane %v809_v47, 4  ;;  %v822_v45 = vmax.f32 %v820_v0, %v821_v40  ;;  %v587_v6 = vmax.f32 %v585_v16, %v586_v10 }
  0xa7   : > { %v604_v4 = vsel %vm540_vm1, %v1825_v46, -inf  ;;  %v935_v49 = vmax.f32 %v933_v36, %v934_v38  ;;  %v699_v1 = vrot.slane %v698_v32, 2  ;;  %v923_v51 = vrot.slane %v922_v13, 4 }
  0xa8   : > { %v999_v53 = vsel %vm455_vm4, %v596_v42, %v709_v9  ;;  %v811_v28 = vmax.f32 %v809_v47, %v810_v55  ;;  %v588_v48 = vrot.slane %v587_v6, 1  ;;  %v605_v41 = vrot.slane %v604_v4, 4 }
  0xa9   : > { %v1016_v22 = vsel %vm1008_vm10, %v999_v53, %v822_v45  ;;  %v700_v63 = vmax.f32 %v698_v32, %v699_v1  ;;  %v717_v20 = vsel %vm653_vm3, %v1825_v46, -inf  ;;  %v924_v54 = vmax.f32 %v922_v13, %v923_v51 }
  0xaa   : > { %v2039_v23 = vsel %vm1025_vm11, %v1016_v22, %v935_v49  ;;  %v812_v62 = vrot.slane %v811_v28, 2  ;;  %v589_v52 = vmax.f32 %v587_v6, %v588_v48  ;;  %v606_v61 = vmax.f32 %v604_v4, %v605_v41 }
  0xab   : > { %v1064_v11 = vsel %vm1042_vm12, %v2039_v23, -inf  ;;  %v701_v3 = vrot.slane %v700_v63, 1  ;;  %v718_v12 = vrot.slane %v717_v20, 4  ;;  %v830_v58 = vsel %vm766_vm8, %v1825_v46, -inf }
  0xac   : > { %1065 = vmax.xlane.f32.xlu1 %v1064_v11  ;;  %v813_v14 = vmax.f32 %v811_v28, %v812_v62  ;;  %v925_v7 = vrot.slane %v924_v54, 2  ;;  %v607_v29 = vrot.slane %v606_v61, 2  ;;  %v831_v60 = vrot.slane %v830_v58, 4 }
  0xad   : > { %v943_v57 = vsel %vm879_vm9, %v1825_v46, -inf  ;;  %v702_v24 = vmax.f32 %v700_v63, %v701_v3  ;;  %v719_v50 = vmax.f32 %v717_v20, %v718_v12  ;;  %v597_v34 = vsel %vm540_vm1, %v1800_v56, -inf }
  0xae   : > { %v814_v26 = vrot.slane %v813_v14, 1  ;;  %v944_v59 = vrot.slane %v943_v57, 4  ;;  %v926_v15 = vmax.f32 %v924_v54, %v925_v7  ;;  %v608_v35 = vmax.f32 %v606_v61, %v607_v29  ;;  %v2487_v61 = vld [vmem:[#allocation6_spill] sm:$0xff] }
  0xaf   : > { %v832_v17 = vmax.f32 %v830_v58, %v831_v60  ;;  %v998_v21 = vsel %vm455_vm4, %v589_v52, %v702_v24  ;;  %v720_v27 = vrot.slane %v719_v50, 2  ;;  %v598_v0 = vrot.slane %v597_v34, 4 }
  0xb0   : > { %v815_v43 = vmax.f32 %v813_v14, %v814_v26  ;;  %v945_v5 = vmax.f32 %v943_v57, %v944_v59  ;;  %v927_v39 = vrot.slane %v926_v15, 1  ;;  %v609_v30 = vrot.slane %v608_v35, 1 }
  0xb1   : > { %v833_v42 = vrot.slane %v832_v17, 2  ;;  %v721_v16 = vmax.f32 %v719_v50, %v720_v27  ;;  %v710_v36 = vsel %vm653_vm3, %v1800_v56, -inf  ;;  %v599_v10 = vmax.f32 %v597_v34, %v598_v0  ;;  %v2488_v34 = vld [vmem:[#allocation5_spill] sm:$0xff] }
  0xb2   : > { %v1015_v46 = vsel %vm1008_vm10, %v998_v21, %v815_v43  ;;  %v946_v19 = vrot.slane %v945_v5, 2  ;;  %v928_v8 = vmax.f32 %v926_v15, %v927_v39  ;;  %v610_v18 = vmax.f32 %v608_v35, %v609_v30 }
  0xb3   : > { %v834_v40 = vmax.f32 %v832_v17, %v833_v42  ;;  %v722_v47 = vrot.slane %v721_v16, 1  ;;  %v711_v38 = vrot.slane %v710_v36, 4  ;;  %v823_v32 = vsel %vm766_vm8, %v1800_v56, -inf }
  0xb4   : > { %v947_v9 = vmax.f32 %v945_v5, %v946_v19  ;;  %v2058_v55 = vsel %vm1025_vm11, %v1015_v46, %v928_v8  ;;  %v600_v6 = vrot.slane %v599_v10, 2  ;;  %v824_v13 = vrot.slane %v823_v32, 4 }
  0xb5   : > { %v835_v45 = vrot.slane %v834_v40, 1  ;;  %v1061_v4 = vsel %vm1042_vm12, %v2058_v55, -inf  ;;  %v723_v49 = vmax.f32 %v721_v16, %v722_v47  ;;  %v712_v1 = vmax.f32 %v710_v36, %v711_v38 }
  0xb6   : > { %v948_v53 = vrot.slane %v947_v9, 1  ;;  %1062 = vmax.xlane.f32.xlu0 %v1061_v4  ;;  %v601_v22 = vmax.f32 %v599_v10, %v600_v6  ;;  %v825_v48 = vmax.f32 %v823_v32, %v824_v13  ;;  %v936_v51 = vsel %vm879_vm9, %v1800_v56, -inf }
  0xb7   : > { %v836_v28 = vmax.f32 %v834_v40, %v835_v45  ;;  %v1001_v63 = vsel %vm455_vm4, %v610_v18, %v723_v49  ;;  %v713_v62 = vrot.slane %v712_v1, 2  ;;  %v937_v20 = vrot.slane %v936_v51, 4 }
  0xb8   : > { %v949_v41 = vmax.f32 %v947_v9, %v948_v53  ;;  %v602_v52 = vrot.slane %v601_v22, 1  ;;  %v826_v54 = vrot.slane %v825_v48, 2  ;;  %v618_v3 = vsel %vm540_vm1, %v2487_v61, -inf }
  0xb9   : > { %v1018_v11 = vsel %vm1008_vm10, %v1001_v63, %v836_v28  ;;  %v714_v12 = vmax.f32 %v712_v1, %v713_v62  ;;  %v938_v58 = vmax.f32 %v936_v51, %v937_v20  ;;  %v619_v7 = vrot.slane %v618_v3, 4 }
  0xba   : > { %v2069_v14 = vsel %vm1025_vm11, %v1018_v11, %v949_v41  ;;  %v603_v29 = vmax.f32 %v601_v22, %v602_v52  ;;  %v827_v60 = vmax.f32 %v825_v48, %v826_v54  ;;  %v731_v57 = vsel %vm653_vm3, %v2487_v61, -inf }
  0xbb   : > { %v1070_v56 = vsel %vm1042_vm12, %v2069_v14, -inf  ;;  %v715_v24 = vrot.slane %v714_v12, 1  ;;  %v939_v26 = vrot.slane %v938_v58, 2  ;;  %v620_v50 = vmax.f32 %v618_v3, %v619_v7 }
  0xbc   : > { %1071 = vmax.xlane.f32.xlu1 %v1070_v56  ;;  %v732_v59 = vrot.slane %v731_v57, 4  ;;  %v828_v15 = vrot.slane %v827_v60, 1  ;;  %v844_v35 = vsel %vm766_vm8, %v2487_v61, -inf  ;;  %v957_v17 = vsel %vm879_vm9, %v2487_v61, -inf }
  0xbd   : > { %v611_v43 = vsel %vm540_vm1, %v2488_v34, -inf  ;;  %v716_v21 = vmax.f32 %v714_v12, %v715_v24  ;;  %v940_v27 = vmax.f32 %v938_v58, %v939_v26  ;;  %v621_v5 = vrot.slane %v620_v50, 2 }
  0xbe   : > { %v733_v39 = vmax.f32 %v731_v57, %v732_v59  ;;  %v829_v30 = vmax.f32 %v827_v60, %v828_v15  ;;  %v845_v42 = vrot.slane %v844_v35, 4  ;;  %v958_v0 = vrot.slane %v957_v17, 4 }
  0xbf   : > { %v612_v46 = vrot.slane %v611_v43, 4  ;;  %v941_v16 = vrot.slane %v940_v27, 1  ;;  %v1000_v19 = vsel %vm455_vm4, %v603_v29, %v716_v21  ;;  %v622_v36 = vmax.f32 %v620_v50, %v621_v5  ;;  %v2489_v29 = vld [vmem:[#allocation10_spill] sm:$0xff] }
  0xc0   : > { %v734_v8 = vrot.slane %v733_v39, 2  ;;  %v1017_v18 = vsel %vm1008_vm10, %v1000_v19, %v829_v30  ;;  %v846_v40 = vmax.f32 %v844_v35, %v845_v42  ;;  %v959_v10 = vmax.f32 %v957_v17, %v958_v0 }
  0xc1   : > { %v613_v47 = vmax.f32 %v611_v43, %v612_v46  ;;  %v942_v9 = vmax.f32 %v940_v27, %v941_v16  ;;  %v623_v38 = vrot.slane %v622_v36, 1  ;;  %v724_v45 = vsel %vm653_vm3, %v2488_v34, -inf }
  0xc2   : > { %v735_v32 = vmax.f32 %v733_v39, %v734_v8  ;;  %v847_v6 = vrot.slane %v846_v40, 2  ;;  %v960_v13 = vrot.slane %v959_v10, 2  ;;  %v725_v49 = vrot.slane %v724_v45, 4 }
  0xc3   : > { %v614_v4 = vrot.slane %v613_v47, 2  ;;  %v2086_v53 = vsel %vm1025_vm11, %v1017_v18, %v942_v9  ;;  %v624_v1 = vmax.f32 %v622_v36, %v623_v38  ;;  %v837_v22 = vsel %vm766_vm8, %v2488_v34, -inf }
  0xc4   : > { %v736_v28 = vrot.slane %v735_v32, 1  ;;  %v1067_v48 = vsel %vm1042_vm12, %v2086_v53, -inf  ;;  %v848_v51 = vmax.f32 %v846_v40, %v847_v6  ;;  %v961_v41 = vmax.f32 %v959_v10, %v960_v13  ;;  %v2490_v13 = vld [vmem:[#allocation9_spill] sm:$0xff] }
  0xc5   : > { %v615_v63 = vmax.f32 %v613_v47, %v614_v4  ;;  %1068 = vmax.xlane.f32.xlu0 %v1067_v48  ;;  %v726_v20 = vmax.f32 %v724_v45, %v725_v49  ;;  %v838_v11 = vrot.slane %v837_v22, 4  ;;  %v950_v52 = vsel %vm879_vm9, %v2488_v34, -inf }
  0xc6   : > { %v737_v62 = vmax.f32 %v735_v32, %v736_v28  ;;  %v849_v54 = vrot.slane %v848_v51, 1  ;;  %v962_v61 = vrot.slane %v961_v41, 1  ;;  %v951_v12 = vrot.slane %v950_v52, 4 }
  0xc7   : > { %v616_v3 = vrot.slane %v615_v63, 1  ;;  %v727_v7 = vrot.slane %v726_v20, 2  ;;  %v839_v56 = vmax.f32 %v837_v22, %v838_v11  ;;  %v632_v60 = vsel %vm540_vm1, %v2489_v29, -inf }
  0xc8   : > { %v1003_v58 = vsel %vm455_vm4, %v624_v1, %v737_v62  ;;  %v850_v57 = vmax.f32 %v848_v51, %v849_v54  ;;  %v963_v24 = vmax.f32 %v961_v41, %v962_v61  ;;  %v952_v50 = vmax.f32 %v950_v52, %v951_v12 }
  0xc9   : > { %v617_v26 = vmax.f32 %v615_v63, %v616_v3  ;;  %v728_v59 = vmax.f32 %v726_v20, %v727_v7  ;;  %v840_v15 = vrot.slane %v839_v56, 2  ;;  %v633_v35 = vrot.slane %v632_v60, 4 }
  0xca   : > { %v745_v17 = vsel %vm653_vm3, %v2489_v29, -inf  ;;  %v1020_v34 = vsel %vm1008_vm10, %v1003_v58, %v850_v57  ;;  %v953_v43 = vrot.slane %v952_v50, 2  ;;  %v858_v27 = vsel %vm766_vm8, %v2489_v29, -inf }
  0xcb   : > { %v746_v21 = vrot.slane %v745_v17, 4  ;;  %v2103_v5 = vsel %vm1025_vm11, %v1020_v34, %v963_v24  ;;  %v729_v39 = vrot.slane %v728_v59, 1  ;;  %v841_v30 = vmax.f32 %v839_v56, %v840_v15 }
  0xcc   : > { %v634_v42 = vmax.f32 %v632_v60, %v633_v35  ;;  %v1076_v0 = vsel %vm1042_vm12, %v2103_v5, -inf  ;;  %v954_v46 = vmax.f32 %v952_v50, %v953_v43  ;;  %v859_v19 = vrot.slane %v858_v27, 4 }
  0xcd   : > { %v747_v16 = vmax.f32 %v745_v17, %v746_v21  ;;  %1077 = vmax.xlane.f32.xlu1 %v1076_v0  ;;  %v730_v36 = vmax.f32 %v728_v59, %v729_v39  ;;  %v842_v8 = vrot.slane %v841_v30, 1  ;;  %v971_v40 = vsel %vm879_vm9, %v2489_v29, -inf  ;;  %v2491_v21 = vld [vmem:[#allocation8_spill] sm:$0xff] }
  0xce   : > { %v635_v18 = vrot.slane %v634_v42, 2  ;;  %v955_v10 = vrot.slane %v954_v46, 1  ;;  %v860_v9 = vmax.f32 %v858_v27, %v859_v19  ;;  %v972_v38 = vrot.slane %v971_v40, 4 }
  0xcf   : > { %v748_v47 = vrot.slane %v747_v16, 2  ;;  %v843_v32 = vmax.f32 %v841_v30, %v842_v8  ;;  %v1002_v45 = vsel %vm455_vm4, %v617_v26, %v730_v36  ;;  %v625_v4 = vsel %vm540_vm1, %v2490_v13, -inf }
  0xd0   : > { %v636_v6 = vmax.f32 %v634_v42, %v635_v18  ;;  %v956_v49 = vmax.f32 %v954_v46, %v955_v10  ;;  %v861_v28 = vrot.slane %v860_v9, 2  ;;  %v973_v22 = vmax.f32 %v971_v40, %v972_v38 }
  0xd1   : > { %v749_v1 = vmax.f32 %v747_v16, %v748_v47  ;;  %v1019_v48 = vsel %vm1008_vm10, %v1002_v45, %v843_v32  ;;  %v626_v41 = vrot.slane %v625_v4, 4  ;;  %v738_v63 = vsel %vm653_vm3, %v2490_v13, -inf }
  0xd2   : > { %v637_v51 = vrot.slane %v636_v6, 1  ;;  %v2116_v62 = vsel %vm1025_vm11, %v1019_v48, %v956_v49  ;;  %v862_v11 = vmax.f32 %v860_v9, %v861_v28  ;;  %v974_v52 = vrot.slane %v973_v22, 2 }
  0xd3   : > { %v750_v20 = vrot.slane %v749_v1, 1  ;;  %v1073_v54 = vsel %vm1042_vm12, %v2116_v62, -inf  ;;  %v627_v3 = vmax.f32 %v625_v4, %v626_v41  ;;  %v739_v12 = vrot.slane %v738_v63, 4 }
  0xd4   : > { %v638_v61 = vmax.f32 %v636_v6, %v637_v51  ;;  %1074 = vmax.xlane.f32.xlu0 %v1073_v54  ;;  %v863_v7 = vrot.slane %v862_v11, 1  ;;  %v975_v56 = vmax.f32 %v973_v22, %v974_v52  ;;  %v851_v29 = vsel %vm766_vm8, %v2490_v13, -inf  ;;  %v2492_v54 = vld [vmem:[#allocation7_spill] sm:$0xff] }
  0xd5   : > { %v751_v58 = vmax.f32 %v749_v1, %v750_v20  ;;  %v628_v60 = vrot.slane %v627_v3, 2  ;;  %v740_v57 = vmax.f32 %v738_v63, %v739_v12  ;;  %v852_v24 = vrot.slane %v851_v29, 4 }
  0xd6   : > { %v964_v26 = vsel %vm879_vm9, %v2490_v13, -inf  ;;  %v864_v50 = vmax.f32 %v862_v11, %v863_v7  ;;  %v976_v59 = vrot.slane %v975_v56, 1  ;;  %v646_v27 = vsel %vm540_vm1, %v2491_v21, -inf }
  0xd7   : > { %v1005_v15 = vsel %vm455_vm4, %v638_v61, %v751_v58  ;;  %v965_v35 = vrot.slane %v964_v26, 4  ;;  %v629_v17 = vmax.f32 %v627_v3, %v628_v60  ;;  %v741_v34 = vrot.slane %v740_v57, 2 }
  0xd8   : > { %v853_v43 = vmax.f32 %v851_v29, %v852_v24  ;;  %v977_v39 = vmax.f32 %v975_v56, %v976_v59  ;;  %v1022_v30 = vsel %vm1008_vm10, %v1005_v15, %v864_v50  ;;  %v647_v0 = vrot.slane %v646_v27, 4  ;;  %v2145_v24 = vpop.xlane.xlu1 %469 }
  0xd9   : > { %v966_v42 = vmax.f32 %v964_v26, %v965_v35  ;;  %v630_v46 = vrot.slane %v629_v17, 1  ;;  %v742_v16 = vmax.f32 %v740_v57, %v741_v34  ;;  %v759_v36 = vsel %vm653_vm3, %v2491_v21, -inf }
  0xda   : > { %v854_v19 = vrot.slane %v853_v43, 2  ;;  %v2131_v8 = vsel %vm1025_vm11, %v1022_v30, %v977_v39  ;;  %v648_v40 = vmax.f32 %v646_v27, %v647_v0  ;;  %v760_v10 = vrot.slane %v759_v36, 4 }
  0xdb   : > { %v967_v18 = vrot.slane %v966_v42, 2  ;;  %v1082_v47 = vsel %vm1042_vm12, %v2131_v8, -inf  ;;  %v631_v9 = vmax.f32 %v629_v17, %v630_v46  ;;  %v743_v38 = vrot.slane %v742_v16, 1 }
  0xdc   : > { %v855_v32 = vmax.f32 %v853_v43, %v854_v19  ;;  %1083 = vmax.xlane.f32.xlu1 %v1082_v47  ;;  %v649_v6 = vrot.slane %v648_v40, 2  ;;  %v761_v13 = vmax.f32 %v759_v36, %v760_v10  ;;  %v872_v4 = vsel %vm766_vm8, %v2491_v21, -inf }
  0xdd   : > { %v968_v45 = vmax.f32 %v966_v42, %v967_v18  ;;  %v744_v49 = vmax.f32 %v742_v16, %v743_v38  ;;  %v873_v28 = vrot.slane %v872_v4, 4  ;;  %v985_v22 = vsel %vm879_vm9, %v2491_v21, -inf  ;;  %v2156_v42 = vpop.xlane.xlu0 %466 }
  0xde   : > { %v856_v1 = vrot.slane %v855_v32, 1  ;;  %v650_v51 = vmax.f32 %v648_v40, %v649_v6  ;;  %v762_v41 = vrot.slane %v761_v13, 2  ;;  %v986_v63 = vrot.slane %v985_v22, 4 }
  0xdf   : > { %v969_v48 = vrot.slane %v968_v45, 1  ;;  %v1004_v11 = vsel %vm455_vm4, %v631_v9, %v744_v49  ;;  %v874_v52 = vmax.f32 %v872_v4, %v873_v28  ;;  %v639_v61 = vsel %vm540_vm1, %v2492_v54, -inf }
  0xe0   : > { %v857_v20 = vmax.f32 %v855_v32, %v856_v1  ;;  %v651_v12 = vrot.slane %v650_v51, 1  ;;  %v763_v58 = vmax.f32 %v761_v13, %v762_v41  ;;  %v987_v7 = vmax.f32 %v985_v22, %v986_v63  ;;  %v476_v32 = vpop.xlane.xlu1 %475 }
  0xe1   : > { %v970_v3 = vmax.f32 %v968_v45, %v969_v48  ;;  %v875_v29 = vrot.slane %v874_v52, 2  ;;  %v640_v60 = vrot.slane %v639_v61, 4  ;;  %v752_v57 = vsel %vm653_vm3, %v2492_v54, -inf  ;;  %v473_v48 = vpop.xlane.xlu0 %472 }
  0xe2   : > { %v1021_v56 = vsel %vm1008_vm10, %v1004_v11, %v857_v20  ;;  %v652_v50 = vmax.f32 %v650_v51, %v651_v12  ;;  %v764_v59 = vrot.slane %v763_v58, 1  ;;  %v988_v15 = vrot.slane %v987_v7, 2 }
  0xe3   : > { %v2148_v26 = vsel %vm1025_vm11, %v1021_v56, %v970_v3  ;;  %v876_v17 = vmax.f32 %v874_v52, %v875_v29  ;;  %v641_v34 = vmax.f32 %v639_v61, %v640_v60  ;;  %v753_v43 = vrot.slane %v752_v57, 4 }
  0xe4   : > { %v1079_v35 = vsel %vm1042_vm12, %v2148_v26, -inf  ;;  %v765_v21 = vmax.f32 %v763_v58, %v764_v59  ;;  %v989_v27 = vmax.f32 %v987_v7, %v988_v15  ;;  %v865_v39 = vsel %vm766_vm8, %v2492_v54, -inf }
  0xe5   : > { %1080 = vmax.xlane.f32.xlu0 %v1079_v35  ;;  %v978_v30 = vsel %vm879_vm9, %v2492_v54, -inf  ;;  %v877_v0 = vrot.slane %v876_v17, 1  ;;  %v642_v46 = vrot.slane %v641_v34, 2  ;;  %v754_v16 = vmax.f32 %v752_v57, %v753_v43 }
  0xe6   : > { %v866_v19 = vrot.slane %v865_v39, 4  ;;  %v990_v36 = vrot.slane %v989_v27, 1  ;;  %v1007_v18 = vsel %vm455_vm4, %v652_v50, %v765_v21  ;;  %v979_v40 = vrot.slane %v978_v30, 4 }
  0xe7   : > { %v878_v10 = vmax.f32 %v876_v17, %v877_v0  ;;  %v643_v47 = vmax.f32 %v641_v34, %v642_v46  ;;  %v755_v9 = vrot.slane %v754_v16, 2  ;;  %vm1091_vm13 = vcmask 27664  }
  0xe8   : > { %v867_v38 = vmax.f32 %v865_v39, %v866_v19  ;;  %v991_v45 = vmax.f32 %v989_v27, %v990_v36  ;;  %v980_v6 = vmax.f32 %v978_v30, %v979_v40  ;;  %v1095_v61 = vsel %vm1091_vm13, %v1949_v2, -inf  ;;  %v482_v3 = vpop.xlane.xlu1 %481 }
  0xe9   : > { %v1024_v13 = vsel %vm1008_vm10, %v1007_v18, %v878_v10  ;;  %v644_v4 = vrot.slane %v643_v47, 1  ;;  %v756_v49 = vmax.f32 %v754_v16, %v755_v9  ;;  %v1101_v57 = vsel %vm1091_vm13, %v1983_v37, -inf }
  0xea   : > { %v868_v1 = vrot.slane %v867_v38, 2  ;;  %v2161_v28 = vsel %vm1025_vm11, %v1024_v13, %v991_v45  ;;  %v981_v22 = vrot.slane %v980_v6, 2  ;;  %v1092_v35 = vsel %vm1091_vm13, %v1965_v31, -inf }
  0xeb   : > { %v1088_v51 = vsel %vm1042_vm12, %v2161_v28, -inf  ;;  %v645_v41 = vmax.f32 %v643_v47, %v644_v4  ;;  %v757_v63 = vrot.slane %v756_v49, 1  ;;  %v1107_v17 = vsel %vm1091_vm13, %v2013_v44, -inf }
  0xec   : > { %v869_v20 = vmax.f32 %v867_v38, %v868_v1  ;;  %1089 = vmax.xlane.f32.xlu1 %v1088_v51  ;;  %v982_v11 = vmax.f32 %v980_v6, %v981_v22  ;;  %vm1140_vm14 = vcmask 44064   ;;  %v1098_v27 = vsel %vm1091_vm13, %v1996_v25, -inf }
  0xed   : > { %v758_v52 = vmax.f32 %v756_v49, %v757_v63  ;;  %v479_v29 = vpop.xlane.xlu0 %478  ;;  %v1113_v39 = vsel %vm1091_vm13, %v2039_v23, -inf  ;;  %vm514_vm15 = vcmask 7168   ;;  %vm523_vm0 = vcmask 9216  }
  0xee   : > { %v870_v54 = vrot.slane %v869_v20, 1  ;;  %v983_v12 = vrot.slane %v982_v11, 1  ;;  %v1104_v36 = vsel %vm1091_vm13, %v2026_v33, -inf  ;;  %v1110_v47 = vsel %vm1091_vm13, %v2058_v55, -inf }
  0xef   : > { %v1006_v7 = vsel %vm455_vm4, %v645_v41, %v758_v52  ;;  %v1144_v9 = vsel %vm1140_vm14, %v1949_v2, -inf  ;;  %v1116_v13 = vsel %vm1091_vm13, %v2086_v53, -inf  ;;  %v1150_v4 = vsel %vm1140_vm14, %v1983_v37, -inf }
  0xf0   : > { %v871_v58 = vmax.f32 %v869_v20, %v870_v54  ;;  %v984_v56 = vmax.f32 %v982_v11, %v983_v12  ;;  %1096 = vmax.xlane.f32.xlu1 %v1095_v61  ;;  %vm324_vm1 = vcmask 0   ;;  %v1141_v22 = vsel %vm1140_vm14, %v1965_v31, -inf }
  0xf1   : > { %v1147_v63 = vsel %vm1140_vm14, %v1996_v25, -inf  ;;  %v1156_v20 = vsel %vm1140_vm14, %v2013_v44, -inf  ;;  %v1122_v54 = vsel %vm1091_vm13, %v2116_v62, -inf  ;;  %v1162_v61 = vsel %vm1140_vm14, %v2039_v23, -inf }
  0xf2   : > { %v1023_v60 = vsel %vm1008_vm10, %v1006_v7, %v871_v58  ;;  %vm1189_vm2 = vcmask 60464   ;;  %v1159_v58 = vsel %vm1140_vm14, %v2058_v55, -inf  ;;  %vm1254_vm3 = vcmask 15360  }
  0xf3   : > { %v2176_v50 = vsel %vm1025_vm11, %v1023_v60, %v984_v56  ;;  %v488_v15 = vpop.xlane.xlu1 %487  ;;  %v1193_v12 = vsel %vm1189_vm2, %v1949_v2, -inf  ;;  %v1199_v7 = vsel %vm1189_vm2, %v1983_v37, -inf  ;;  %v1190_v56 = vsel %vm1189_vm2, %v1965_v31, -inf }
  0xf4   : > { %v1085_v59 = vsel %vm1042_vm12, %v2176_v50, -inf  ;;  %1102 = vmax.xlane.f32.xlu1 %v1101_v57  ;;  %v2187_v43 = vsel %vm1140_vm14, %v2176_v50, -inf  ;;  %v1196_v2 = vsel %vm1189_vm2, %v1996_v25, -inf  ;;  %v1137_v60 = vsel %vm1091_vm13, %v2161_v28, -inf }
  0xf5   : > { %1086 = vmax.xlane.f32.xlu0 %v1085_v59  ;;  %v1128_v37 = vsel %vm1091_vm13, %v2148_v26, -inf  ;;  %v1168_v57 = vsel %vm1140_vm14, %v2069_v14, -inf  ;;  %v1134_v31 = vsel %vm1091_vm13, %v2176_v50, -inf  ;;  %v1174_v59 = vsel %vm1140_vm14, %v2103_v5, -inf }
  0xf6   : > { %v485_v34 = vpop.xlane.xlu0 %484  ;;  %v1165_v25 = vsel %vm1140_vm14, %v2086_v53, -inf  ;;  %vm1271_vm4 = vcmask 23552   ;;  %vm1288_vm5 = vcmask 27648  }
  0xf7   : > { %v495_v21 = vpop.xlane.xlu1 %494 }
  0xf8   : > { %1108 = vmax.xlane.f32.xlu1 %v1107_v17  ;;  %v516_v30 = vsel %vm514_vm15, %v2145_v24, %v495_v21  ;;  %v1119_v24 = vsel %vm1091_vm13, %v2069_v14, -inf  ;;  %v1211_v17 = vsel %vm1189_vm2, %v2039_v23, -inf  ;;  %v1180_v21 = vsel %vm1140_vm14, %v2131_v8, -inf }
  0xf9   : > { %1093 = vmax.xlane.f32.xlu0 %v1092_v35  ;;  %525 = vst.msk [vmem:[%s2192_s29 + $0x2] sm:$0x3] %vm523_vm0, %v516_v30  ;;  %v1171_v35 = vsel %vm1140_vm14, %v2116_v62, -inf  ;;  %v1177_v23 = vsel %vm1140_vm14, %v2148_v26, -inf  ;;  %v1229_v30 = vsel %vm1189_vm2, %v2131_v8, -inf }
  0xfa   : > { %v492_v0 = vpop.xlane.xlu0 %491 }
  0xfb   : > { %v515_v46 = vsel %vm514_vm15, %v2156_v42, %v492_v0  ;;  %v501_v16 = vpop.xlane.xlu1 %500  ;;  %v1220_v0 = vsel %vm1189_vm2, %v2116_v62, -inf }
  0xfc   : > { %1114 = vmax.xlane.f32.xlu1 %v1113_v39  ;;  %524 = vst.msk [vmem:[%s2192_s29] sm:$0x3] %vm523_vm0, %v515_v46  ;;  %v518_v19 = vsel %vm514_vm15, %v476_v32, %v501_v16  ;;  %v1217_v39 = vsel %vm1189_vm2, %v2069_v14, -inf  ;;  %v1235_v14 = vsel %vm1189_vm2, %v2161_v28, -inf }
  0xfd   : > { %1099 = vmax.xlane.f32.xlu0 %v1098_v27  ;;  %527 = vst.msk [vmem:[%s2192_s29 + $0x6] sm:$0x3] %vm523_vm0, %v518_v19  ;;  %v1186_v27 = vsel %vm1140_vm14, %v2161_v28, -inf }
  0xfe   : > { %v498_v18 = vpop.xlane.xlu0 %497 }
  0xff   : > { %v517_v42 = vsel %vm514_vm15, %v473_v48, %v498_v18  ;;  %v507_v40 = vpop.xlane.xlu1 %506  ;;  %v1125_v48 = vsel %vm1091_vm13, %v2103_v5, -inf }
 0x100   : > { %1120 = vmax.xlane.f32.xlu1 %v1119_v24  ;;  %526 = vst.msk [vmem:[%s2192_s29 + $0x4] sm:$0x3] %vm523_vm0, %v517_v42  ;;  %v520_v10 = vsel %vm514_vm15, %v482_v3, %v507_v40  ;;  %v1153_v3 = vsel %vm1140_vm14, %v2026_v33, -inf }
 0x101   : > { %1105 = vmax.xlane.f32.xlu0 %v1104_v36  ;;  %529 = vst.msk [vmem:[%s2192_s29 + $0xa] sm:$0x3] %vm523_vm0, %v520_v10 }
 0x102   : > { %v504_v38 = vpop.xlane.xlu0 %503 }
 0x103   : > { %v519_v32 = vsel %vm514_vm15, %v479_v29, %v504_v38  ;;  %v513_v45 = vpop.xlane.xlu1 %512  ;;  %v1131_v29 = vsel %vm1091_vm13, %v2131_v8, -inf }
 0x104   : > { %1145 = vmax.xlane.f32.xlu1 %v1144_v9  ;;  %528 = vst.msk [vmem:[%s2192_s29 + $0x8] sm:$0x3] %vm523_vm0, %v519_v32  ;;  %v522_v6 = vsel %vm514_vm15, %v488_v15, %v513_v45  ;;  %v1205_v15 = vsel %vm1189_vm2, %v2013_v44, -inf  ;;  %v1208_v44 = vsel %vm1189_vm2, %v2058_v55, -inf  ;;  %v1214_v55 = vsel %vm1189_vm2, %v2086_v53, -inf }
 0x105   : > { %1111 = vmax.xlane.f32.xlu0 %v1110_v47  ;;  %531 = vst.msk [vmem:[%s2192_s29 + $0xe] sm:$0x3] %vm523_vm0, %v522_v6  ;;  %v1232_v53 = vsel %vm1189_vm2, %v2176_v50, -inf }
 0x106   : > { %v510_v49 = vpop.xlane.xlu0 %509 }
 0x107   : > { %v521_v1 = vsel %vm514_vm15, %v485_v34, %v510_v49  ;;  %v320_v51 = vpop.xlane.xlu1 %319  ;;  %v1202_v34 = vsel %vm1189_vm2, %v2026_v33, -inf  ;;  %v1223_v33 = vsel %vm1189_vm2, %v2103_v5, -inf  ;;  %v1226_v5 = vsel %vm1189_vm2, %v2148_v26, -inf }
 0x108   : > { %1151 = vmax.xlane.f32.xlu1 %v1150_v4  ;;  %530 = vst.msk [vmem:[%s2192_s29 + $0xc] sm:$0x3] %vm523_vm0, %v521_v1 }
 0x109   : > { %1117 = vmax.xlane.f32.xlu0 %v1116_v13  ;;  %327 = vst.msk [vmem:[%s207_s5 + $0x2] sm:$0x1] %vm324_vm1, %v320_v51 }
 0x10a   : > { %v314_v41 = vpop.xlane.xlu0 %313 }
 0x10b   : > { %325 = vst.msk [vmem:[%s207_s5] sm:$0x1] %vm324_vm1, %v314_v41  ;;  %v323_v52 = vpop.xlane.xlu1 %322 }
 0x10c   : > { %1126 = vmax.xlane.f32.xlu1 %v1125_v48  ;;  %328 = vst.msk [vmem:[%s207_s5 + $0x3] sm:$0x1] %vm324_vm1, %v323_v52 }
 0x10d   : > { %1142 = vmax.xlane.f32.xlu0 %v1141_v22 }
 0x10e   : > { %v317_v11 = vpop.xlane.xlu0 %316 }
 0x10f   : > { %326 = vst.msk [vmem:[%s207_s5 + $0x1] sm:$0x1] %vm324_vm1, %v317_v11 }
 0x110   : > { %1157 = vmax.xlane.f32.xlu1 %v1156_v20 }
 0x111   : > { %1148 = vmax.xlane.f32.xlu0 %v1147_v63 }
 0x114   : > { %1163 = vmax.xlane.f32.xlu1 %v1162_v61  ;;  %v1045_v46 = vpop.xlane.xlu0 %1044 }
 0x115   : > { %1123 = vmax.xlane.f32.xlu0 %v1122_v54 }
 0x118   : > { %1194 = vmax.xlane.f32.xlu1 %v1193_v12 }
 0x119   : > { %1154 = vmax.xlane.f32.xlu0 %v1153_v3 }
 0x11c   : > { %1200 = vmax.xlane.f32.xlu1 %v1199_v7 }
 0x11d   : > { %1160 = vmax.xlane.f32.xlu0 %v1159_v58 }
 0x120   : > { %1132 = vmax.xlane.f32.xlu1 %v1131_v29 }
 0x121   : > { %1191 = vmax.xlane.f32.xlu0 %v1190_v56 }
 0x123   : > { %v1051_v19 = vpop.xlane.xlu0 %1050 }
 0x124   : > { %1138 = vmax.xlane.f32.xlu1 %v1137_v60 }
 0x125   : > { %1197 = vmax.xlane.f32.xlu0 %v1196_v2 }
 0x128   : > { %1169 = vmax.xlane.f32.xlu1 %v1168_v57 }
 0x129   : > { %1129 = vmax.xlane.f32.xlu0 %v1128_v37 }
 0x12c   : > { %1175 = vmax.xlane.f32.xlu1 %v1174_v59 }
 0x12d   : > { %1135 = vmax.xlane.f32.xlu0 %v1134_v31 }
 0x130   : > { %1206 = vmax.xlane.f32.xlu1 %v1205_v15 }
 0x131   : > { %1166 = vmax.xlane.f32.xlu0 %v1165_v25 }
 0x132   : > { %v2319_v36 = vpop.xlane.xlu0 %1056 }
 0x134   : > { %1212 = vmax.xlane.f32.xlu1 %v1211_v17 }
 0x135   : > { %1172 = vmax.xlane.f32.xlu0 %v1171_v35 }
 0x138   : > { %1181 = vmax.xlane.f32.xlu1 %v1180_v21 }
 0x139   : > { %1203 = vmax.xlane.f32.xlu0 %v1202_v34 }
 0x13c   : > { %1187 = vmax.xlane.f32.xlu1 %v1186_v27 }
 0x13d   : > { %1209 = vmax.xlane.f32.xlu0 %v1208_v44 }
 0x140   : > { %1218 = vmax.xlane.f32.xlu1 %v1217_v39 }
 0x141   : > { %1178 = vmax.xlane.f32.xlu0 %v1177_v23 }
 0x143   : > { %v2323_v24 = vpop.xlane.xlu0 %1062 }
 0x144   : > { %1224 = vmax.xlane.f32.xlu1 %v1223_v33 }
 0x145   : > { %1184 = vmax.xlane.f32.xlu0 %v2187_v43  ;;  %v1048_v43 = vpop.xlane.xlu1 %1047 }
 0x148   : > { %1230 = vmax.xlane.f32.xlu1 %v1229_v30 }
 0x149   : > { %1215 = vmax.xlane.f32.xlu0 %v1214_v55  ;;  %v1054_v8 = vpop.xlane.xlu1 %1053 }
 0x14c   : > { %1236 = vmax.xlane.f32.xlu1 %v1235_v14 }
 0x14d   : > { %1221 = vmax.xlane.f32.xlu0 %v1220_v0  ;;  %v2315_v16 = vpop.xlane.xlu1 %1059 }
 0x151   : > { %1227 = vmax.xlane.f32.xlu0 %v1226_v5  ;;  %v2317_v62 = vpop.xlane.xlu1 %1065 }
 0x152   : > { %v2327_v18 = vpop.xlane.xlu0 %1068 }
 0x155   : > { %1233 = vmax.xlane.f32.xlu0 %v1232_v53  ;;  %v2321_v28 = vpop.xlane.xlu1 %1071 }
 0x15a   : > { %v2325_v26 = vpop.xlane.xlu1 %1077 }
 0x161   : > { %v2331_v50 = vpop.xlane.xlu0 %1074 }
 0x169   : > { %v2329_v42 = vpop.xlane.xlu1 %1083 }
 0x172   : > { %v2335_v10 = vpop.xlane.xlu0 %1080 }
 0x179   : > { %v2333_v40 = vpop.xlane.xlu1 %1089 }
 0x17d   : > { %v1097_v47 = vpop.xlane.xlu1 %1096 }
 0x17e   : > { %v1239_v61 = vsel %vm514_vm15, %v1048_v43, %v1097_v47 }
 0x181   : > { %v1103_v38 = vpop.xlane.xlu1 %1102 }
 0x182   : > { %v2337_v9 = vpop.xlane.xlu0 %1086  ;;  %v1241_v56 = vsel %vm514_vm15, %v1054_v8, %v1103_v38 }
 0x185   : > { %v1109_v45 = vpop.xlane.xlu1 %1108 }
 0x186   : > { %v1094_v32 = vpop.xlane.xlu0 %1093  ;;  %v1243_v55 = vsel %vm514_vm15, %v2315_v16, %v1109_v45 }
 0x187   : > { %v1238_v57 = vsel %vm514_vm15, %v1045_v46, %v1094_v32 }
 0x189   : > { %v1115_v13 = vpop.xlane.xlu1 %1114 }
 0x18a   : > { %v1100_v6 = vpop.xlane.xlu0 %1099  ;;  %v1245_v43 = vsel %vm514_vm15, %v2317_v62, %v1115_v13 }
 0x18b   : > { %v1240_v35 = vsel %vm514_vm15, %v1051_v19, %v1100_v6 }
 0x18d   : > { %v2339_v49 = vpop.xlane.xlu1 %1120 }
 0x18e   : > { %v1106_v4 = vpop.xlane.xlu0 %1105 }
 0x18f   : > { %v1242_v16 = vsel %vm514_vm15, %v2319_v36, %v1106_v4  ;;  %v1247_v36 = vsel %vm514_vm15, %v2321_v28, %v2339_v49 }
 0x191   : > { %v1146_v22 = vpop.xlane.xlu1 %1145 }
 0x192   : > { %v1112_v1 = vpop.xlane.xlu0 %1111  ;;  %v1256_v3 = vsel %vm1254_vm3, %v1239_v61, %v1146_v22 }
 0x193   : > { %v1244_v62 = vsel %vm514_vm15, %v2323_v24, %v1112_v1 }
 0x195   : > { %v1152_v51 = vpop.xlane.xlu1 %1151 }
 0x196   : > { %v2341_v48 = vpop.xlane.xlu0 %1117  ;;  %v1258_v29 = vsel %vm1254_vm3, %v1241_v56, %v1152_v51 }
 0x197   : > { %v1246_v49 = vsel %vm514_vm15, %v2327_v18, %v2341_v48 }
 0x199   : > { %v2343_v63 = vpop.xlane.xlu1 %1126 }
 0x19a   : > { %v1143_v41 = vpop.xlane.xlu0 %1142  ;;  %v1249_v24 = vsel %vm514_vm15, %v2325_v26, %v2343_v63 }
 0x19b   : > { %v1255_v31 = vsel %vm1254_vm3, %v1238_v57, %v1143_v41 }
 0x19d   : > { %v1158_v11 = vpop.xlane.xlu1 %1157 }
 0x19e   : > { %v1149_v20 = vpop.xlane.xlu0 %1148  ;;  %v1260_v30 = vsel %vm1254_vm3, %v1243_v55, %v1158_v11 }
 0x19f   : > { %v1257_v17 = vsel %vm1254_vm3, %v1240_v35, %v1149_v20 }
 0x1a1   : > { %v1164_v54 = vpop.xlane.xlu1 %1163 }
 0x1a2   : > { %v2346_v52 = vpop.xlane.xlu0 %1123  ;;  %v1262_v53 = vsel %vm1254_vm3, %v1245_v43, %v1164_v54 }
 0x1a3   : > { %v1248_v18 = vsel %vm514_vm15, %v2331_v50, %v2346_v52 }
 0x1a5   : > { %v1195_v58 = vpop.xlane.xlu1 %1194 }
 0x1a6   : > { %v1155_v12 = vpop.xlane.xlu0 %1154  ;;  %v1273_v7 = vsel %vm1271_vm4, %v1256_v3, %v1195_v58 }
 0x1a7   : > { %1290 = vst.msk [vmem:[%s2351_s9 + $0x4] sm:$0xf] %vm1288_vm5, %v1273_v7  ;;  %v1259_v47 = vsel %vm1254_vm3, %v1242_v16, %v1155_v12 }
 0x1a9   : > { %v1201_v60 = vpop.xlane.xlu1 %1200 }
 0x1aa   : > { %v1161_v2 = vpop.xlane.xlu0 %1160  ;;  %v1275_v37 = vsel %vm1271_vm4, %v1258_v29, %v1201_v60 }
 0x1ab   : > { %1292 = vst.msk [vmem:[%s2351_s9 + $0xc] sm:$0xf] %vm1288_vm5, %v1275_v37  ;;  %v1261_v6 = vsel %vm1254_vm3, %v1244_v62, %v1161_v2 }
 0x1ad   : > { %v1133_v25 = vpop.xlane.xlu1 %1132 }
 0x1ae   : > { %v1192_v59 = vpop.xlane.xlu0 %1191  ;;  %v1251_v3 = vsel %vm514_vm15, %v2329_v42, %v1133_v25 }
 0x1af   : > { %v1272_v15 = vsel %vm1271_vm4, %v1255_v31, %v1192_v59 }
 0x1b0   : > { %1289 = vst.msk [vmem:[%s2351_s9] sm:$0xf] %vm1288_vm5, %v1272_v15 }
 0x1b1   : > { %v1139_v21 = vpop.xlane.xlu1 %1138 }
 0x1b2   : > { %v1198_v34 = vpop.xlane.xlu0 %1197  ;;  %v1253_v42 = vsel %vm514_vm15, %v2333_v40, %v1139_v21 }
 0x1b3   : > { %v1274_v44 = vsel %vm1271_vm4, %v1257_v17, %v1198_v34 }
 0x1b4   : > { %1291 = vst.msk [vmem:[%s2351_s9 + $0x8] sm:$0xf] %vm1288_vm5, %v1274_v44 }
 0x1b5   : > { %v1170_v23 = vpop.xlane.xlu1 %1169 }
 0x1b6   : > { %v1130_v27 = vpop.xlane.xlu0 %1129  ;;  %v1264_v4 = vsel %vm1254_vm3, %v1247_v36, %v1170_v23 }
 0x1b7   : > { %v1250_v50 = vsel %vm514_vm15, %v2335_v10, %v1130_v27 }
 0x1b9   : > { %v1176_v33 = vpop.xlane.xlu1 %1175 }
 0x1ba   : > { %v2373_v39 = vpop.xlane.xlu0 %1135  ;;  %v1266_v1 = vsel %vm1254_vm3, %v1249_v24, %v1176_v33 }
 0x1bb   : > { %v1252_v59 = vsel %vm514_vm15, %v2337_v9, %v2373_v39 }
 0x1bd   : > { %v1207_v14 = vpop.xlane.xlu1 %1206 }
 0x1be   : > { %v1167_v0 = vpop.xlane.xlu0 %1166  ;;  %v1277_v5 = vsel %vm1271_vm4, %v1260_v30, %v1207_v14 }
 0x1bf   : > { %1294 = vst.msk [vmem:[%s2351_s9 + $0x14] sm:$0xf] %vm1288_vm5, %v1277_v5  ;;  %v1263_v12 = vsel %vm1254_vm3, %v1246_v49, %v1167_v0 }
 0x1c1   : > { %v1213_v46 = vpop.xlane.xlu1 %1212 }
 0x1c2   : > { %v1173_v8 = vpop.xlane.xlu0 %1172  ;;  %v1279_v19 = vsel %vm1271_vm4, %v1262_v53, %v1213_v46 }
 0x1c3   : > { %1296 = vst.msk [vmem:[%s2351_s9 + $0x1c] sm:$0xf] %vm1288_vm5, %v1279_v19  ;;  %v1265_v48 = vsel %vm1254_vm3, %v1248_v18, %v1173_v8 }
 0x1c5   : > { %v1182_v32 = vpop.xlane.xlu1 %1181 }
 0x1c6   : > { %v1204_v38 = vpop.xlane.xlu0 %1203  ;;  %v1268_v26 = vsel %vm1254_vm3, %v1251_v3, %v1182_v32 }
 0x1c7   : > { %v1276_v45 = vsel %vm1271_vm4, %v1259_v47, %v1204_v38 }
 0x1c8   : > { %1293 = vst.msk [vmem:[%s2351_s9 + $0x10] sm:$0xf] %vm1288_vm5, %v1276_v45 }
 0x1c9   : > { %v1188_v22 = vpop.xlane.xlu1 %1187 }
 0x1ca   : > { %v1210_v13 = vpop.xlane.xlu0 %1209  ;;  %v1270_v29 = vsel %vm1254_vm3, %v1253_v42, %v1188_v22 }
 0x1cb   : > { %v1278_v51 = vsel %vm1271_vm4, %v1261_v6, %v1210_v13 }
 0x1cc   : > { %1295 = vst.msk [vmem:[%s2351_s9 + $0x18] sm:$0xf] %vm1288_vm5, %v1278_v51 }
 0x1cd   : > { %v1219_v20 = vpop.xlane.xlu1 %1218 }
 0x1ce   : > { %v1179_v41 = vpop.xlane.xlu0 %1178  ;;  %v1281_v11 = vsel %vm1271_vm4, %v1264_v4, %v1219_v20 }
 0x1cf   : > { %1298 = vst.msk [vmem:[%s2351_s9 + $0x24] sm:$0xf] %vm1288_vm5, %v1281_v11  ;;  %v1267_v40 = vsel %vm1254_vm3, %v1250_v50, %v1179_v41 }
 0x1d1   : > { %v1225_v61 = vpop.xlane.xlu1 %1224 }
 0x1d2   : > { %v1185_v54 = vpop.xlane.xlu0 %1184  ;;  %v1283_v28 = vsel %vm1271_vm4, %v1266_v1, %v1225_v61 }
 0x1d3   : > { %1300 = vst.msk [vmem:[%s2351_s9 + $0x2c] sm:$0xf] %vm1288_vm5, %v1283_v28  ;;  %v1269_v25 = vsel %vm1254_vm3, %v1252_v59, %v1185_v54 }
 0x1d5   : > { %v1231_v58 = vpop.xlane.xlu1 %1230 }
 0x1d6   : > { %v1216_v63 = vpop.xlane.xlu0 %1215  ;;  %v1285_v56 = vsel %vm1271_vm4, %v1268_v26, %v1231_v58 }
 0x1d7   : > { %v1280_v7 = vsel %vm1271_vm4, %v1263_v12, %v1216_v63  ;;  %1302 = vst.msk [vmem:[%s2351_s9 + $0x34] sm:$0xf] %vm1288_vm5, %v1285_v56 }
 0x1d8   : > { %1297 = vst.msk [vmem:[%s2351_s9 + $0x20] sm:$0xf] %vm1288_vm5, %v1280_v7 }
 0x1d9   : > { %v1237_v60 = vpop.xlane.xlu1 %1236 }
 0x1da   : > { %v1222_v2 = vpop.xlane.xlu0 %1221  ;;  %v1287_v57 = vsel %vm1271_vm4, %v1270_v29, %v1237_v60 }
 0x1db   : > { %v1282_v37 = vsel %vm1271_vm4, %v1265_v48, %v1222_v2  ;;  %1304 = vst.msk [vmem:[%s2351_s9 + $0x3c] sm:$0xf] %vm1288_vm5, %v1287_v57 }
 0x1dc   : > { %1299 = vst.msk [vmem:[%s2351_s9 + $0x28] sm:$0xf] %vm1288_vm5, %v1282_v37 }
 0x1de   : > { %v1228_v52 = vpop.xlane.xlu0 %1227 }
 0x1df   : > { %v1284_v31 = vsel %vm1271_vm4, %v1267_v40, %v1228_v52 }
 0x1e0   : > { %1301 = vst.msk [vmem:[%s2351_s9 + $0x30] sm:$0xf] %vm1288_vm5, %v1284_v31 }
 0x1e2   : > { %v1234_v15 = vpop.xlane.xlu0 %1233 }
 0x1e3   : > { %v1286_v35 = vsel %vm1271_vm4, %v1269_v25, %v1234_v15 }
 0x1e4   : > { %1303 = vst.msk [vmem:[%s2351_s9 + $0x38] sm:$0xf] %vm1288_vm5, %v1286_v35 }
 0x1e5 PF: > { %p14_p8 = scmp.ge.s32.totalorder %s1611_s17, 4   ;;  %s2493_s12 = smov %s1558_s13 }
 0x1e6   : > { %s2494_s13 = smov %s1562_s14  ;;  %s2495_s14 = smov %s1621_s20 }
 0x1e7   : > { %s2496_s15 = smov %s1611_s17  ;;  %16 = sbr.rel (!%p14_p8) target bundleno = 3 (0x3), region = 88 }
 0x1ee   :  { %1363 = vsyncpa [#allocation3], 1 }
 0x1ef   :  { %1365 = vsyncpa [#allocation3 + $0x1], 1 }

</bundles_post_ra>
